<compile_context>
chip_gen: v7x
topology: tpu7x:2x2x1
jax: 0.10.0
libtpu: 0.0.40
codegen_flags: <defaults>
</compile_context>

<pallas_src>
import jax
import jax.numpy as jnp
from jax.experimental import pallas as pl
from jax.experimental.pallas import tpu as pltpu

EPS = 1e-5


def _bn_fold(z, gamma, beta, inv_b):
    """Training-mode BN folded to per-feature scale/shift.

    Two-pass stats (mean, then centered second moment) computed per 128-lane column
    tile so the centered temporaries never exceed one lane-tile's worth of vregs.
    """
    n = z.shape[1]
    scales, shifts = [], []
    for c in range(0, n, 128):
        zc = z[:, c:c + 128]
        mu = jnp.sum(zc, axis=0, keepdims=True) * inv_b
        d = zc - mu
        var = jnp.sum(d * d, axis=0, keepdims=True) * inv_b
        s = gamma[:, c:c + 128] * jax.lax.rsqrt(var + EPS)
        scales.append(s)
        shifts.append(beta[:, c:c + 128] - mu * s)
    if len(scales) == 1:
        return scales[0], shifts[0]
    return jnp.concatenate(scales, axis=1), jnp.concatenate(shifts, axis=1)


def critic_kernel(obs_ref, act_ref,
                  w1_ref, g1_ref, be1_ref,
                  w2o_ref, w2a_ref, g2_ref, be2_ref,
                  w4_ref, b4_ref,
                  out_ref):
    B = obs_ref.shape[0]
    inv_b = 1.0 / float(B)

    # ---- fc1 (bias cancels under training-mode BN); bf16 MXU operands, f32 acc ----
    z1 = jnp.dot(obs_ref[...].astype(jnp.bfloat16), w1_ref[...],
                 preferred_element_type=jnp.float32)            # [B,256] f32

    # ---- BatchNorm1d(256) + ReLU ----
    scale1, shift1 = _bn_fold(z1, g1_ref[...], be1_ref[...], inv_b)
    h1 = jnp.maximum(z1 * scale1 + shift1, 0.0).astype(jnp.bfloat16)

    # ---- fc2 on concat([h1, act]) ----
    # obs-part: one K=256 MXU dot (f32 accumulation)
    z2 = jnp.dot(h1, w2o_ref[...], preferred_element_type=jnp.float32)   # [B,128]
    # act-part: K = action_dim (tiny) -> VPU broadcast-FMAs, no MXU push for K=4
    a = act_ref[...]                                                     # [B,A] f32
    for k in range(act_ref.shape[1]):
        z2 = z2 + a[:, k:k + 1] * w2a_ref[k:k + 1, :]

    # ---- BatchNorm1d(128) + ReLU ----
    scale2, shift2 = _bn_fold(z2, g2_ref[...], be2_ref[...], inv_b)
    h2 = jnp.maximum(z2 * scale2 + shift2, 0.0)                          # [B,128] f32

    # ---- fc4 ----
    if out_ref.shape[-1] == 1:
        # w4 stored as a (1,128) broadcast row: VPU multiply + lane reduce, no N=1 MXU op.
        q = jnp.sum(h2 * w4_ref[...], axis=-1, keepdims=True) + b4_ref[...]
    else:
        # w4 stored matmul-ready as (128, out_dim): no in-kernel transpose.
        q = jnp.dot(h2, w4_ref[...], preferred_element_type=jnp.float32) + b4_ref[...]
    # TODO(synk): out last dim == 1 lowers to masked partial stores; emit lane-dense
    # ([1,B] / instance-stacked) output if a downstream consumer ever makes it worthwhile.
    out_ref[...] = q.astype(out_ref.dtype)


def _critic_forward_impl(obs, act, kp):
    """obs: [N, B, input_dim] f32, act: [N, B, action_dim] f32 -> [N, B, out_dim] f32.

    One pallas_call for all N instances: the grid iterates over instances (weights stay
    resident in VMEM via constant index_maps), BN stays whole-batch per instance.
    """
    N, B, _ = obs.shape
    out_dim = kp["b4"].shape[-1]

    def inst_spec(shape):      # per-instance input: leading dim squeezed, indexed by n
        return pl.BlockSpec((None,) + shape, lambda n: (n,) + (0,) * len(shape))

    def shared_spec(shape):    # weight: same block every step -> DMA'd once, resident
        return pl.BlockSpec(shape, lambda n: (0,) * len(shape))

    in_specs = [
        inst_spec((B, obs.shape[2])),
        inst_spec((B, act.shape[2])),
        shared_spec(kp["w1"].shape),
        shared_spec(kp["g1"].shape),
        shared_spec(kp["be1"].shape),
        shared_spec(kp["w2o"].shape),
        shared_spec(kp["w2a"].shape),
        shared_spec(kp["g2"].shape),
        shared_spec(kp["be2"].shape),
        shared_spec(kp["w4"].shape),
        shared_spec(kp["b4"].shape),
    ]
    out_specs = pl.BlockSpec((None, B, out_dim), lambda n: (n, 0, 0))

    return pl.pallas_call(
        critic_kernel,
        out_shape=jax.ShapeDtypeStruct((N, B, out_dim), jnp.float32),
        grid=(N,),
        in_specs=in_specs,
        out_specs=out_specs,
        compiler_params=pltpu.CompilerParams(
            dimension_semantics=("parallel",)),     # lets v7x shard instances over 2 TCs
    )(obs, act,
      kp["w1"], kp["g1"], kp["be1"],
      kp["w2o"], kp["w2a"], kp["g2"], kp["be2"],
      kp["w4"], kp["b4"])


critic_forward = jax.jit(_critic_forward_impl)


def make_params(key, input_dim, action_dim, output_dim=1):
    """Deterministic synthetic init matching the module's parameter shapes (f32,
    reference layout, biases included)."""
    ks = jax.random.split(key, 8)
    lim1 = 1.0 / jnp.sqrt(256.0)     # hidden_init uses weight.size()[0] = out_features
    lim2 = 1.0 / jnp.sqrt(128.0)
    return {
        # fc1: Linear(input_dim, 256), stored as [in, out]
        "w1": jax.random.uniform(ks[0], (input_dim, 256), jnp.float32, -lim1, lim1),
        "b1": jax.random.uniform(ks[1], (1, 256), jnp.float32, -lim1, lim1),
        # BatchNorm1d(256) affine params
        "g1": jnp.ones((1, 256), jnp.float32),
        "be1": jnp.zeros((1, 256), jnp.float32),
        # fc2: Linear(256 + action_dim, 128), split into obs-part / act-part, [in, out]
        "w2o": jax.random.uniform(ks[2], (256, 128), jnp.float32, -lim2, lim2),
        "w2a": jax.random.uniform(ks[3], (action_dim, 128), jnp.float32, -lim2, lim2),
        "b2": jax.random.uniform(ks[4], (1, 128), jnp.float32, -lim2, lim2),
        # BatchNorm1d(128)
        "g2": jnp.ones((1, 128), jnp.float32),
        "be2": jnp.zeros((1, 128), jnp.float32),
        # fc4: Linear(128, output_dim), weight uniform(-0.001, 0.001); PyTorch [out, in]
        "w4t": jax.random.uniform(ks[5], (output_dim, 128), jnp.float32, -0.001, 0.001),
        "b4": jax.random.uniform(ks[6], (1, output_dim), jnp.float32, -0.001, 0.001),
    }


def prepare_kernel_params(p):
    """One-time conversion to kernel-ready params: bf16 MXU weights, matmul-ready fc4,
    BN-cancelled biases dropped. Done once, outside the per-step call path."""
    out_dim = p["w4t"].shape[0]
    kp = {
        "w1": p["w1"].astype(jnp.bfloat16),
        "g1": p["g1"], "be1": p["be1"],
        "w2o": p["w2o"].astype(jnp.bfloat16),
        "w2a": p["w2a"],                      # stays f32: consumed by VPU FMAs, not MXU
        "g2": p["g2"], "be2": p["be2"],
        "b4": p["b4"],
    }
    if out_dim == 1:
        kp["w4"] = p["w4t"].reshape(1, 128)   # broadcast row for the VPU lane-reduce
    else:
        kp["w4"] = jnp.transpose(p["w4t"])    # [128, out_dim], matmul-ready
    return kp


def critic_ref(obs, act, p):
    """Pure-JAX reference matching PyTorch forward exactly (biases included, f32)."""
    z1 = obs @ p["w1"] + p["b1"]
    mu1 = jnp.mean(z1, axis=0, keepdims=True)
    var1 = jnp.mean((z1 - mu1) ** 2, axis=0, keepdims=True)
    h1 = jnp.maximum((z1 - mu1) / jnp.sqrt(var1 + EPS) * p["g1"] + p["be1"], 0.0)
    z2 = h1 @ p["w2o"] + act @ p["w2a"] + p["b2"]
    mu2 = jnp.mean(z2, axis=0, keepdims=True)
    var2 = jnp.mean((z2 - mu2) ** 2, axis=0, keepdims=True)
    h2 = jnp.maximum((z2 - mu2) / jnp.sqrt(var2 + EPS) * p["g2"] + p["be2"], 0.0)
    return h2 @ p["w4t"].T + p["b4"]


if __name__ == "__main__":
    # N_INST independent minibatches (e.g. MADDPG agents / target-critic evals) share
    # one pallas_call; B=128 keeps the batch a multiple of the 8-row sublane tile and
    # BN needs the whole batch per instance anyway.
    N_INST, B, INPUT_DIM, ACTION_DIM, OUTPUT_DIM = 4, 128, 48, 4, 1

    key = jax.random.PRNGKey(0)
    k_obs, k_act, k_par = jax.random.split(key, 3)
    obs = jax.random.normal(k_obs, (N_INST, B, INPUT_DIM), jnp.float32)
    act = jax.random.normal(k_act, (N_INST, B, ACTION_DIM), jnp.float32)
    params = make_params(k_par, INPUT_DIM, ACTION_DIM, OUTPUT_DIM)
    kparams = prepare_kernel_params(params)   # pre-cast / pre-layout ONCE

    q = critic_forward(obs, act, kparams)
    jax.block_until_ready(q)

    # Reference: full f32 with explicit biases; kernel uses bf16 MXU operands and drops
    # BN-cancelled biases -> tolerance-based comparison.
    q_ref = jax.vmap(lambda o, a: critic_ref(o, a, params))(obs, act)
    assert q.shape == (N_INST, B, OUTPUT_DIM)
    assert jnp.allclose(q, q_ref, atol=3e-3, rtol=2e-2), (
        "mismatch vs JAX reference: max abs diff = "
        f"{float(jnp.max(jnp.abs(q - q_ref)))}")

    # TODO(synk): PyTorch training-mode BatchNorm1d also updates running_mean/running_var
    # (with unbiased variance); only the normalization math is reproduced here.
    print("KERNEL_OK")
</pallas_src>

<mosaic_0001>
module attributes {stable_mosaic.version = 11 : i64} {
  func.func @critic_kernel(%arg0: i32, %arg1: memref<1x128x48xf32, #tpu.memory_space<vmem>>, %arg2: memref<1x128x4xf32, #tpu.memory_space<vmem>>, %arg3: memref<48x256xbf16, #tpu.memory_space<vmem>>, %arg4: memref<1x256xf32, #tpu.memory_space<vmem>>, %arg5: memref<1x256xf32, #tpu.memory_space<vmem>>, %arg6: memref<256x128xbf16, #tpu.memory_space<vmem>>, %arg7: memref<4x128xf32, #tpu.memory_space<vmem>>, %arg8: memref<1x128xf32, #tpu.memory_space<vmem>>, %arg9: memref<1x128xf32, #tpu.memory_space<vmem>>, %arg10: memref<1x128xf32, #tpu.memory_space<vmem>>, %arg11: memref<1x1xf32, #tpu.memory_space<vmem>>, %arg12: memref<1x128x1xf32, #tpu.memory_space<vmem>>) attributes {dimension_semantics = [#tpu.dimension_semantics<parallel>], iteration_bounds = array<i64: 4>, scalar_prefetch = 0 : i64, scratch_operands = 0 : i64, tpu.core_type = #tpu.core_type<tc>, window_params = [{transform_indices = @transform_0, window_bounds = array<i64: 1, 128, 48>}, {transform_indices = @transform_1, window_bounds = array<i64: 1, 128, 4>}, {pipeline_mode = #tpu.pipeline_mode<synchronous>, transform_indices = @transform_2, window_bounds = array<i64: 48, 256>}, {pipeline_mode = #tpu.pipeline_mode<synchronous>, transform_indices = @transform_3, window_bounds = array<i64: 1, 256>}, {pipeline_mode = #tpu.pipeline_mode<synchronous>, transform_indices = @transform_4, window_bounds = array<i64: 1, 256>}, {pipeline_mode = #tpu.pipeline_mode<synchronous>, transform_indices = @transform_5, window_bounds = array<i64: 256, 128>}, {pipeline_mode = #tpu.pipeline_mode<synchronous>, transform_indices = @transform_6, window_bounds = array<i64: 4, 128>}, {pipeline_mode = #tpu.pipeline_mode<synchronous>, transform_indices = @transform_7, window_bounds = array<i64: 1, 128>}, {pipeline_mode = #tpu.pipeline_mode<synchronous>, transform_indices = @transform_8, window_bounds = array<i64: 1, 128>}, {pipeline_mode = #tpu.pipeline_mode<synchronous>, transform_indices = @transform_9, window_bounds = array<i64: 1, 128>}, {pipeline_mode = #tpu.pipeline_mode<synchronous>, transform_indices = @transform_10, window_bounds = array<i64: 1, 1>}, {transform_indices = @transform_11, window_bounds = array<i64: 1, 128, 1>}]} {
    %c0 = arith.constant 0 : index
    %c0_0 = arith.constant 0 : index
    %c0_1 = arith.constant 0 : index
    %0 = vector.load %arg1[%c0, %c0_0, %c0_1] : memref<1x128x48xf32, #tpu.memory_space<vmem>>, vector<1x128x48xf32>
    %1 = vector.shape_cast %0 : vector<1x128x48xf32> to vector<128x48xf32>
    %2 = arith.truncf %1 : vector<128x48xf32> to vector<128x48xbf16>
    %c0_2 = arith.constant 0 : index
    %c0_3 = arith.constant 0 : index
    %3 = vector.load %arg3[%c0_2, %c0_3] : memref<48x256xbf16, #tpu.memory_space<vmem>>, vector<48x256xbf16>
    %cst = arith.constant dense<0.000000e+00> : vector<128x256xf32>
    %4 = tpu.matmul %2, %3, %cst {dimension_numbers = #tpu.dot_dimension_numbers<[1], [0], [0], [1], [0, 0, 1, 1], [], []>} : vector<128x48xbf16>, vector<48x256xbf16>, vector<128x256xf32> -> vector<128x256xf32>
    %c0_4 = arith.constant 0 : index
    %c0_5 = arith.constant 0 : index
    %5 = vector.load %arg4[%c0_4, %c0_5] : memref<1x256xf32, #tpu.memory_space<vmem>>, vector<1x256xf32>
    %c0_6 = arith.constant 0 : index
    %c0_7 = arith.constant 0 : index
    %6 = vector.load %arg5[%c0_6, %c0_7] : memref<1x256xf32, #tpu.memory_space<vmem>>, vector<1x256xf32>
    %7 = vector.extract_strided_slice %4 {offsets = [0, 0], sizes = [128, 128], strides = [1, 1]} : vector<128x256xf32> to vector<128x128xf32>
    %cst_8 = arith.constant dense<0.000000e+00> : vector<128xf32>
    %8 = vector.multi_reduction <add>, %7, %cst_8 [0] : vector<128x128xf32> to vector<128xf32>
    %9 = vector.shape_cast %8 : vector<128xf32> to vector<1x128xf32>
    %cst_9 = arith.constant 7.812500e-03 : f32
    %10 = vector.broadcast %cst_9 : f32 to vector<1x128xf32>
    %11 = arith.mulf %9, %10 : vector<1x128xf32>
    %12 = vector.broadcast %11 : vector<1x128xf32> to vector<128x128xf32>
    %13 = arith.subf %7, %12 : vector<128x128xf32>
    %14 = arith.mulf %13, %13 : vector<128x128xf32>
    %cst_10 = arith.constant dense<0.000000e+00> : vector<128xf32>
    %15 = vector.multi_reduction <add>, %14, %cst_10 [0] : vector<128x128xf32> to vector<128xf32>
    %16 = vector.shape_cast %15 : vector<128xf32> to vector<1x128xf32>
    %cst_11 = arith.constant 7.812500e-03 : f32
    %17 = vector.broadcast %cst_11 : f32 to vector<1x128xf32>
    %18 = arith.mulf %16, %17 : vector<1x128xf32>
    %19 = vector.extract_strided_slice %5 {offsets = [0, 0], sizes = [1, 128], strides = [1, 1]} : vector<1x256xf32> to vector<1x128xf32>
    %cst_12 = arith.constant 9.99999974E-6 : f32
    %20 = vector.broadcast %cst_12 : f32 to vector<1x128xf32>
    %21 = arith.addf %18, %20 : vector<1x128xf32>
    %22 = math.rsqrt %21 : vector<1x128xf32>
    %23 = arith.mulf %19, %22 : vector<1x128xf32>
    %24 = vector.extract_strided_slice %6 {offsets = [0, 0], sizes = [1, 128], strides = [1, 1]} : vector<1x256xf32> to vector<1x128xf32>
    %25 = arith.mulf %11, %23 : vector<1x128xf32>
    %26 = arith.subf %24, %25 : vector<1x128xf32>
    %27 = vector.extract_strided_slice %4 {offsets = [0, 128], sizes = [128, 128], strides = [1, 1]} : vector<128x256xf32> to vector<128x128xf32>
    %cst_13 = arith.constant dense<0.000000e+00> : vector<128xf32>
    %28 = vector.multi_reduction <add>, %27, %cst_13 [0] : vector<128x128xf32> to vector<128xf32>
    %29 = vector.shape_cast %28 : vector<128xf32> to vector<1x128xf32>
    %cst_14 = arith.constant 7.812500e-03 : f32
    %30 = vector.broadcast %cst_14 : f32 to vector<1x128xf32>
    %31 = arith.mulf %29, %30 : vector<1x128xf32>
    %32 = vector.broadcast %31 : vector<1x128xf32> to vector<128x128xf32>
    %33 = arith.subf %27, %32 : vector<128x128xf32>
    %34 = arith.mulf %33, %33 : vector<128x128xf32>
    %cst_15 = arith.constant dense<0.000000e+00> : vector<128xf32>
    %35 = vector.multi_reduction <add>, %34, %cst_15 [0] : vector<128x128xf32> to vector<128xf32>
    %36 = vector.shape_cast %35 : vector<128xf32> to vector<1x128xf32>
    %cst_16 = arith.constant 7.812500e-03 : f32
    %37 = vector.broadcast %cst_16 : f32 to vector<1x128xf32>
    %38 = arith.mulf %36, %37 : vector<1x128xf32>
    %39 = vector.extract_strided_slice %5 {offsets = [0, 128], sizes = [1, 128], strides = [1, 1]} : vector<1x256xf32> to vector<1x128xf32>
    %cst_17 = arith.constant 9.99999974E-6 : f32
    %40 = vector.broadcast %cst_17 : f32 to vector<1x128xf32>
    %41 = arith.addf %38, %40 : vector<1x128xf32>
    %42 = math.rsqrt %41 : vector<1x128xf32>
    %43 = arith.mulf %39, %42 : vector<1x128xf32>
    %44 = vector.extract_strided_slice %6 {offsets = [0, 128], sizes = [1, 128], strides = [1, 1]} : vector<1x256xf32> to vector<1x128xf32>
    %45 = arith.mulf %31, %43 : vector<1x128xf32>
    %46 = arith.subf %44, %45 : vector<1x128xf32>
    %47 = tpu.concatenate %23, %43 in 1 : vector<1x128xf32>, vector<1x128xf32> -> vector<1x256xf32>
    %48 = tpu.concatenate %26, %46 in 1 : vector<1x128xf32>, vector<1x128xf32> -> vector<1x256xf32>
    %49 = vector.broadcast %47 : vector<1x256xf32> to vector<128x256xf32>
    %50 = arith.mulf %4, %49 : vector<128x256xf32>
    %51 = vector.broadcast %48 : vector<1x256xf32> to vector<128x256xf32>
    %52 = arith.addf %50, %51 : vector<128x256xf32>
    %cst_18 = arith.constant 0.000000e+00 : f32
    %53 = vector.broadcast %cst_18 : f32 to vector<128x256xf32>
    %54 = arith.maximumf %52, %53 : vector<128x256xf32>
    %55 = arith.truncf %54 : vector<128x256xf32> to vector<128x256xbf16>
    %c0_19 = arith.constant 0 : index
    %c0_20 = arith.constant 0 : index
    %56 = vector.load %arg6[%c0_19, %c0_20] : memref<256x128xbf16, #tpu.memory_space<vmem>>, vector<256x128xbf16>
    %cst_21 = arith.constant dense<0.000000e+00> : vector<128x128xf32>
    %57 = tpu.matmul %55, %56, %cst_21 {dimension_numbers = #tpu.dot_dimension_numbers<[1], [0], [0], [1], [0, 0, 1, 1], [], []>} : vector<128x256xbf16>, vector<256x128xbf16>, vector<128x128xf32> -> vector<128x128xf32>
    %c0_22 = arith.constant 0 : index
    %c0_23 = arith.constant 0 : index
    %c0_24 = arith.constant 0 : index
    %58 = vector.load %arg2[%c0_22, %c0_23, %c0_24] : memref<1x128x4xf32, #tpu.memory_space<vmem>>, vector<1x128x4xf32>
    %59 = vector.shape_cast %58 : vector<1x128x4xf32> to vector<128x4xf32>
    %60 = vector.extract_strided_slice %59 {offsets = [0, 0], sizes = [128, 1], strides = [1, 1]} : vector<128x4xf32> to vector<128x1xf32>
    %c0_25 = arith.constant 0 : index
    %c0_26 = arith.constant 0 : index
    %61 = vector.load %arg7[%c0_25, %c0_26] : memref<4x128xf32, #tpu.memory_space<vmem>>, vector<1x128xf32>
    %62 = vector.broadcast %60 : vector<128x1xf32> to vector<128x128xf32>
    %63 = vector.broadcast %61 : vector<1x128xf32> to vector<128x128xf32>
    %64 = arith.mulf %62, %63 : vector<128x128xf32>
    %65 = arith.addf %57, %64 : vector<128x128xf32>
    %66 = vector.extract_strided_slice %59 {offsets = [0, 1], sizes = [128, 1], strides = [1, 1]} : vector<128x4xf32> to vector<128x1xf32>
    %c1 = arith.constant 1 : index
    %c0_27 = arith.constant 0 : index
    %67 = vector.load %arg7[%c1, %c0_27] : memref<4x128xf32, #tpu.memory_space<vmem>>, vector<1x128xf32>
    %68 = vector.broadcast %66 : vector<128x1xf32> to vector<128x128xf32>
    %69 = vector.broadcast %67 : vector<1x128xf32> to vector<128x128xf32>
    %70 = arith.mulf %68, %69 : vector<128x128xf32>
    %71 = arith.addf %65, %70 : vector<128x128xf32>
    %72 = vector.extract_strided_slice %59 {offsets = [0, 2], sizes = [128, 1], strides = [1, 1]} : vector<128x4xf32> to vector<128x1xf32>
    %c2 = arith.constant 2 : index
    %c0_28 = arith.constant 0 : index
    %73 = vector.load %arg7[%c2, %c0_28] : memref<4x128xf32, #tpu.memory_space<vmem>>, vector<1x128xf32>
    %74 = vector.broadcast %72 : vector<128x1xf32> to vector<128x128xf32>
    %75 = vector.broadcast %73 : vector<1x128xf32> to vector<128x128xf32>
    %76 = arith.mulf %74, %75 : vector<128x128xf32>
    %77 = arith.addf %71, %76 : vector<128x128xf32>
    %78 = vector.extract_strided_slice %59 {offsets = [0, 3], sizes = [128, 1], strides = [1, 1]} : vector<128x4xf32> to vector<128x1xf32>
    %c3 = arith.constant 3 : index
    %c0_29 = arith.constant 0 : index
    %79 = vector.load %arg7[%c3, %c0_29] : memref<4x128xf32, #tpu.memory_space<vmem>>, vector<1x128xf32>
    %80 = vector.broadcast %78 : vector<128x1xf32> to vector<128x128xf32>
    %81 = vector.broadcast %79 : vector<1x128xf32> to vector<128x128xf32>
    %82 = arith.mulf %80, %81 : vector<128x128xf32>
    %83 = arith.addf %77, %82 : vector<128x128xf32>
    %c0_30 = arith.constant 0 : index
    %c0_31 = arith.constant 0 : index
    %84 = vector.load %arg8[%c0_30, %c0_31] : memref<1x128xf32, #tpu.memory_space<vmem>>, vector<1x128xf32>
    %c0_32 = arith.constant 0 : index
    %c0_33 = arith.constant 0 : index
    %85 = vector.load %arg9[%c0_32, %c0_33] : memref<1x128xf32, #tpu.memory_space<vmem>>, vector<1x128xf32>
    %cst_34 = arith.constant dense<0.000000e+00> : vector<128xf32>
    %86 = vector.multi_reduction <add>, %83, %cst_34 [0] : vector<128x128xf32> to vector<128xf32>
    %87 = vector.shape_cast %86 : vector<128xf32> to vector<1x128xf32>
    %cst_35 = arith.constant 7.812500e-03 : f32
    %88 = vector.broadcast %cst_35 : f32 to vector<1x128xf32>
    %89 = arith.mulf %87, %88 : vector<1x128xf32>
    %90 = vector.broadcast %89 : vector<1x128xf32> to vector<128x128xf32>
    %91 = arith.subf %83, %90 : vector<128x128xf32>
    %92 = arith.mulf %91, %91 : vector<128x128xf32>
    %cst_36 = arith.constant dense<0.000000e+00> : vector<128xf32>
    %93 = vector.multi_reduction <add>, %92, %cst_36 [0] : vector<128x128xf32> to vector<128xf32>
    %94 = vector.shape_cast %93 : vector<128xf32> to vector<1x128xf32>
    %cst_37 = arith.constant 7.812500e-03 : f32
    %95 = vector.broadcast %cst_37 : f32 to vector<1x128xf32>
    %96 = arith.mulf %94, %95 : vector<1x128xf32>
    %cst_38 = arith.constant 9.99999974E-6 : f32
    %97 = vector.broadcast %cst_38 : f32 to vector<1x128xf32>
    %98 = arith.addf %96, %97 : vector<1x128xf32>
    %99 = math.rsqrt %98 : vector<1x128xf32>
    %100 = arith.mulf %84, %99 : vector<1x128xf32>
    %101 = arith.mulf %89, %100 : vector<1x128xf32>
    %102 = arith.subf %85, %101 : vector<1x128xf32>
    %103 = vector.broadcast %100 : vector<1x128xf32> to vector<128x128xf32>
    %104 = arith.mulf %83, %103 : vector<128x128xf32>
    %105 = vector.broadcast %102 : vector<1x128xf32> to vector<128x128xf32>
    %106 = arith.addf %104, %105 : vector<128x128xf32>
    %cst_39 = arith.constant 0.000000e+00 : f32
    %107 = vector.broadcast %cst_39 : f32 to vector<128x128xf32>
    %108 = arith.maximumf %106, %107 : vector<128x128xf32>
    %c0_40 = arith.constant 0 : index
    %c0_41 = arith.constant 0 : index
    %109 = vector.load %arg10[%c0_40, %c0_41] : memref<1x128xf32, #tpu.memory_space<vmem>>, vector<1x128xf32>
    %110 = vector.broadcast %109 : vector<1x128xf32> to vector<128x128xf32>
    %111 = arith.mulf %108, %110 : vector<128x128xf32>
    %cst_42 = arith.constant dense<0.000000e+00> : vector<128xf32>
    %112 = vector.multi_reduction <add>, %111, %cst_42 [1] : vector<128x128xf32> to vector<128xf32>
    %113 = vector.shape_cast %112 : vector<128xf32> to vector<128x1xf32>
    %c0_43 = arith.constant 0 : index
    %c0_44 = arith.constant 0 : index
    %114 = vector.load %arg11[%c0_43, %c0_44] : memref<1x1xf32, #tpu.memory_space<vmem>>, vector<1x1xf32>
    %115 = vector.broadcast %114 : vector<1x1xf32> to vector<128x1xf32>
    %116 = arith.addf %113, %115 : vector<128x1xf32>
    %c0_45 = arith.constant 0 : index
    %c0_46 = arith.constant 0 : index
    %c0_47 = arith.constant 0 : index
    %117 = vector.load %arg12[%c0_45, %c0_46, %c0_47] : memref<1x128x1xf32, #tpu.memory_space<vmem>>, vector<1x128x1xf32>
    %118 = vector.shape_cast %117 : vector<1x128x1xf32> to vector<128x1xf32>
    %119 = vector.shape_cast %116 : vector<128x1xf32> to vector<1x128x1xf32>
    tpu.vector_store %arg12[%c0_45, %c0_46, %c0_47], %119 {strides = array<i32>} : memref<1x128x1xf32, #tpu.memory_space<vmem>>, vector<1x128x1xf32>,
    return
  }
  func.func @transform_0(%arg0: i32) -> (i32, i32, i32) {
    %c0_i32 = arith.constant 0 : i32
    %c0_i32_0 = arith.constant 0 : i32
    %c0_i32_1 = arith.constant 0 : i32
    return %arg0, %c0_i32, %c0_i32_0 : i32, i32, i32
  }
  func.func @transform_1(%arg0: i32) -> (i32, i32, i32) {
    %c0_i32 = arith.constant 0 : i32
    %c0_i32_0 = arith.constant 0 : i32
    %c0_i32_1 = arith.constant 0 : i32
    return %arg0, %c0_i32, %c0_i32_0 : i32, i32, i32
  }
  func.func @transform_2(%arg0: i32) -> (i32, i32) {
    %c0_i32 = arith.constant 0 : i32
    %c0_i32_0 = arith.constant 0 : i32
    %c0_i32_1 = arith.constant 0 : i32
    return %c0_i32, %c0_i32_0 : i32, i32
  }
  func.func @transform_3(%arg0: i32) -> (i32, i32) {
    %c0_i32 = arith.constant 0 : i32
    %c0_i32_0 = arith.constant 0 : i32
    %c0_i32_1 = arith.constant 0 : i32
    return %c0_i32, %c0_i32_0 : i32, i32
  }
  func.func @transform_4(%arg0: i32) -> (i32, i32) {
    %c0_i32 = arith.constant 0 : i32
    %c0_i32_0 = arith.constant 0 : i32
    %c0_i32_1 = arith.constant 0 : i32
    return %c0_i32, %c0_i32_0 : i32, i32
  }
  func.func @transform_5(%arg0: i32) -> (i32, i32) {
    %c0_i32 = arith.constant 0 : i32
    %c0_i32_0 = arith.constant 0 : i32
    %c0_i32_1 = arith.constant 0 : i32
    return %c0_i32, %c0_i32_0 : i32, i32
  }
  func.func @transform_6(%arg0: i32) -> (i32, i32) {
    %c0_i32 = arith.constant 0 : i32
    %c0_i32_0 = arith.constant 0 : i32
    %c0_i32_1 = arith.constant 0 : i32
    return %c0_i32, %c0_i32_0 : i32, i32
  }
  func.func @transform_7(%arg0: i32) -> (i32, i32) {
    %c0_i32 = arith.constant 0 : i32
    %c0_i32_0 = arith.constant 0 : i32
    %c0_i32_1 = arith.constant 0 : i32
    return %c0_i32, %c0_i32_0 : i32, i32
  }
  func.func @transform_8(%arg0: i32) -> (i32, i32) {
    %c0_i32 = arith.constant 0 : i32
    %c0_i32_0 = arith.constant 0 : i32
    %c0_i32_1 = arith.constant 0 : i32
    return %c0_i32, %c0_i32_0 : i32, i32
  }
  func.func @transform_9(%arg0: i32) -> (i32, i32) {
    %c0_i32 = arith.constant 0 : i32
    %c0_i32_0 = arith.constant 0 : i32
    %c0_i32_1 = arith.constant 0 : i32
    return %c0_i32, %c0_i32_0 : i32, i32
  }
  func.func @transform_10(%arg0: i32) -> (i32, i32) {
    %c0_i32 = arith.constant 0 : i32
    %c0_i32_0 = arith.constant 0 : i32
    %c0_i32_1 = arith.constant 0 : i32
    return %c0_i32, %c0_i32_0 : i32, i32
  }
  func.func @transform_11(%arg0: i32) -> (i32, i32, i32) {
    %c0_i32 = arith.constant 0 : i32
    %c0_i32_0 = arith.constant 0 : i32
    %c0_i32_1 = arith.constant 0 : i32
    return %arg0, %c0_i32, %c0_i32_0 : i32, i32, i32
  }
}

</mosaic_0001>

<bundles_post_ra>
// kernel: _critic_forward_impl.1
= control target key start
LH: loop header
LB: loop body
LE: loop exit
PB: predicated region body
PF: predicated region fallthrough
CT: control target
= control target key end

     0   :  { %s2145_s19 = smov 0   ;;  %s3166_s0 = inlined_call_operand.vmem [shape: f32[4,128,48], index: 0, kind: input, shape index: {}]   ;;  %s3167_s1 = inlined_call_operand.vmem [shape: f32[4,128,4], index: 1, kind: input, shape index: {}]   ;;  %s3168_s2 = inlined_call_operand.vmem [shape: bf16[48,256], index: 2, kind: input, shape index: {}]   ;;  %s3169_s3 = inlined_call_operand.vmem [shape: f32[1,256], index: 3, kind: input, shape index: {}]   ;;  %s3170_s4 = inlined_call_operand.vmem [shape: f32[1,256], index: 4, kind: input, shape index: {}]   ;;  %s3171_s5 = inlined_call_operand.vmem [shape: bf16[256,128], index: 5, kind: input, shape index: {}]   ;;  %s3172_s6 = inlined_call_operand.vmem [shape: f32[4,128], index: 6, kind: input, shape index: {}]   ;;  %s3173_s7 = inlined_call_operand.vmem [shape: f32[1,128], index: 7, kind: input, shape index: {}]   ;;  %s3174_s8 = inlined_call_operand.vmem [shape: f32[1,128], index: 8, kind: input, shape index: {}]   ;;  %s3175_s9 = inlined_call_operand.vmem [shape: f32[1,128], index: 9, kind: input, shape index: {}]   ;;  %s3176_s10 = inlined_call_operand.<no memory space> [shape: f32[1,1], index: 10, kind: input, shape index: {}]   ;;  %s3177_s11 = inlined_call_operand.vmem [shape: f32[4,128,1], index: 11, kind: output, shape index: {}]  }
   0x1   :  { %v16_v0 = vstv %s3176_s10 }
   0x2   :  { %17 = vst [vmem:[#allocation2] sm:$0x1] %v16_v0 }
   0x3 LB: > { %s1856_s20 = sadd.s32 4294967295, %s2076_s19   ;;  %p1860_p0 = scmp.ge.s32.totalorder %s2076_s19, 1  ;;  %s2076_s19 = sphi %s2145_s19, %s23_s19  }
   0x4   : > { %p349_p1 = scmp.lt.s32.totalorder %s2076_s19, 5 }
   0x6   : > { %p350_p2 = pnand %p1860_p0, %p349_p1 }
   0x8   : > { %353 = sbr.rel (%p350_p2) target bundleno = 940 (0x3ac), region = 64 }
   0xf   : > { %v2039_v1 = vld [vmem:[%s3168_s2 + $0x4] ss:$8 sps:$4 sm:$0xff]   ;;  %p394_p3 = scmp.lt.s32.totalorder %s1856_s20, 3  ;;  %v2041_v2 = vld [vmem:[%s3168_s2] ss:$8 sps:$4 sm:$0xff]   ;;  %v3182_v3 = vmov 0  }
  0x10   : > { %527 = vmatprep.mubr.bf16.mxu0 %v3182_v3  ;;  %2000 = vset.pattern.permute.xlu1 %v3182_v3  ;;  %v2042_v4 = vld [vmem:[%s3168_s2 + $0x14] ss:$8 sps:$4 sm:$0xff]   ;;  %v2044_v5 = vld [vmem:[%s3168_s2 + $0x10] ss:$8 sps:$4 sm:$0xff]   ;;  %v2045_v6 = vld [vmem:[%s3168_s2 + $0x24] ss:$8 sps:$4 sm:$0xff]  }
  0x11   : > { %495 = vmatprep.subr.bf16.mxu0 %v2039_v1  ;;  %s3282_s20 = smov (!%p394_p3, %s1856_s20), 3  ;;  %v2047_v7 = vld [vmem:[%s3168_s2 + $0x20] ss:$8 sps:$4 sm:$0xff]   ;;  %vm470_vm0 = vcmask 392192   ;;  %v3178_v43 = vmov 1   ;;  %v2052_v56 = vld [vmem:[%s3171_s5 + $0x50] sm:$0xff]  }
  0x12   : > { %496 = vmatpush1.bf16.msra.mxu0 %v2041_v2  ;;  %s2170_s30 = sshll.u32 %s3282_s20, 7  ;;  %v2048_v42 = vld [vmem:[%s3171_s5 + $0x40] sm:$0xff]   ;;  %2002 = vset.pattern.permute.xlu0 %v3178_v43  ;;  %v2050_v47 = vld [vmem:[%s3171_s5 + $0x48] sm:$0xff]   ;;  %v2053_v57 = vld [vmem:[%s3171_s5 + $0x10] sm:$0xff]   ;;  %v3180_v58 = vmov 2   ;;  %vm1772_vm1 = vcmask 7168  }
  0x13   : > { %497 = vmatprep.subr.bf16.mxu0 %v2042_v4  ;;  %s2176_s14 = scalar_lea.vmem %s3166_s0, %s2170_s30  ;;  %s2216_s20 = scalar_lea.vmem %s3167_s1, %s2170_s30  ;;  %v2049_v45 = vld [vmem:[%s3171_s5] sm:$0xff]   ;;  %1972 = vmatprep.subr.bf16.mxu1 %v2048_v42  ;;  %v2051_v50 = vld [vmem:[%s3171_s5 + $0x8] sm:$0xff]   ;;  %v2054_v60 = vld [vmem:[%s3171_s5 + $0x58] sm:$0xff]  }
  0x14   : > { %v410_v8 = vld [vmem:[%s2176_s14] sm:$0xff]  ;;  %v411_v9 = vld [vmem:[%s2176_s14 + $0x8] sm:$0xff]  ;;  %v412_v11 = vld [vmem:[%s2176_s14 + $0x10] sm:$0xff]  ;;  %1980 = vmatpush3.bf16.msra.mxu1 %v2049_v45  ;;  %s3129_s21 = scalar_lea.vmem %s3177_s11, %s2170_s30 }
  0x15   : > { %v426_v10 = vpack.c.bf16 %v411_v9, %v410_v8  ;;  %v413_v12 = vld [vmem:[%s2176_s14 + $0x18] sm:$0xff]  ;;  %v414_v14 = vld [vmem:[%s2176_s14 + $0x20] sm:$0xff]  ;;  %v415_v15 = vld [vmem:[%s2176_s14 + $0x28] sm:$0xff]  ;;  %1973 = vmatprep.subr.bf16.mxu1 %v2050_v47 }
  0x16   : > { %498 = vmatpush1.bf16.msra.mxu0 %v2044_v5  ;;  %v427_v13 = vpack.c.bf16 %v413_v12, %v412_v11  ;;  %v428_v16 = vpack.c.bf16 %v415_v15, %v414_v14  ;;  %v416_v17 = vld [vmem:[%s2176_s14 + $0x30] sm:$0xff]  ;;  %v417_v18 = vld [vmem:[%s2176_s14 + $0x38] sm:$0xff]  ;;  %v418_v20 = vld [vmem:[%s2176_s14 + $0x40] sm:$0xff] }
  0x17   : > { %499 = vmatprep.subr.bf16.mxu0 %v2045_v6  ;;  %v429_v19 = vpack.c.bf16 %v417_v18, %v416_v17  ;;  %v419_v21 = vld [vmem:[%s2176_s14 + $0x48] sm:$0xff]  ;;  %v420_v23 = vld [vmem:[%s2176_s14 + $0x50] sm:$0xff]  ;;  %v421_v24 = vld [vmem:[%s2176_s14 + $0x58] sm:$0xff] }
  0x18   : > { %v430_v22 = vpack.c.bf16 %v419_v21, %v418_v20  ;;  %v431_v25 = vpack.c.bf16 %v421_v24, %v420_v23  ;;  %v422_v26 = vld [vmem:[%s2176_s14 + $0x60] sm:$0xff]  ;;  %v423_v27 = vld [vmem:[%s2176_s14 + $0x68] sm:$0xff]  ;;  %v424_v29 = vld [vmem:[%s2176_s14 + $0x70] sm:$0xff]  ;;  %1981 = vmatpush3.bf16.msra.mxu1 %v2051_v50  ;;  %v3189_v20 = vmov 3  }
  0x19   : > { %v432_v28 = vpack.c.bf16 %v423_v27, %v422_v26  ;;  %v425_v30 = vld [vmem:[%s2176_s14 + $0x78] sm:$0xff]  ;;  %v2219_v32 = vld [vmem:[%s2216_s20 + $0x10] sm:$0xff]  ;;  %v2227_v34 = vld [vmem:[%s2216_s20 + $0x28] sm:$0xff]  ;;  %1974 = vmatprep.subr.bf16.mxu1 %v2052_v56 }
  0x1a   : > { %500 = vmatpush1.bf16.msra.mxu0 %v2047_v7  ;;  %v433_v31 = vpack.c.bf16 %v425_v30, %v424_v29  ;;  %967 = vperm.xlu1 %2000, %v2219_v32   ;;  %v2223_v33 = vld [vmem:[%s2216_s20 + $0x18] sm:$0xff]  ;;  %v2251_v44 = vld [vmem:[%s2216_s20] sm:$0xff]  ;;  %v2058_v9 = vld [vmem:[%s3171_s5 + $0x68] sm:$0xff]  }
  0x1b   : > { %v2231_v35 = vld [vmem:[%s2216_s20 + $0x38] sm:$0xff]  ;;  %1908 = vmatprep.subr.bf16.mxu0 %v2048_v42  ;;  %v2056_v6 = vld [vmem:[%s3171_s5 + $0x60] sm:$0xff]   ;;  %v2059_v12 = vld [vmem:[%s3171_s5 + $0x28] sm:$0xff]  }
  0x1c   : > { %1982 = vmatpush3.bf16.msra.mxu1 %v2053_v57  ;;  %v2055_v63 = vld [vmem:[%s3171_s5 + $0x18] sm:$0xff]   ;;  %v2057_v7 = vld [vmem:[%s3171_s5 + $0x20] sm:$0xff]   ;;  %v2332_v18 = vld [vmem:[%s2216_s20 + $0x8] sm:$0xff] }
  0x1d   : > { %1873 = vmatmul.mubr.msk.bf16.vlgmr.msra.gmra.mrb[0].mxu0 %vm470_vm0, %v426_v10  ;;  %1975 = vmatprep.subr.bf16.mxu1 %v2054_v60  ;;  %v2061_v21 = vld [vmem:[%s3171_s5 + $0x30] sm:$0xff]   ;;  %v2063_v23 = vld [vmem:[%s3171_s5 + $0x38] sm:$0xff]  }
  0x1e   : > { %537 = vmatprep.mubr.bf16.mxu0 %v3182_v3  ;;  %972 = vperm.xlu1 %2000, %v2223_v33  }
  0x1f   : > { %1909 = vmatpush3.bf16.msra.mxu0 %v2049_v45  ;;  %1254 = vperm.xlu0 %2002, %v2332_v18  }
  0x20   : > { %1910 = vmatprep.subr.bf16.mxu0 %v2050_v47  ;;  %1983 = vmatpush3.bf16.msra.mxu1 %v2055_v63 }
  0x21   : > { %1976 = vmatprep.subr.bf16.mxu1 %v2056_v6 }
  0x22   : > { %982 = vperm.xlu1 %2000, %v2227_v34  }
  0x23   : > { %1911 = vmatpush3.bf16.msra.mxu0 %v2051_v50 }
  0x24   : > { %1912 = vmatprep.subr.bf16.mxu0 %v2052_v56  ;;  %1984 = vmatpush3.bf16.msra.mxu1 %v2057_v7 }
  0x25   : > { %1874 = vmatmul.mubr.msk.bf16.gmra.mrb[4].mxu0 %vm470_vm0, %v427_v13  ;;  %1977 = vmatprep.subr.bf16.mxu1 %v2058_v9 }
  0x26   : > { %547 = vmatprep.mubr.bf16.mxu0 %v3182_v3  ;;  %992 = vperm.xlu1 %2000, %v2231_v35  }
  0x27   : > { %1913 = vmatpush3.bf16.msra.mxu0 %v2053_v57 }
  0x28   : > { %1914 = vmatprep.subr.bf16.mxu0 %v2054_v60  ;;  %1985 = vmatpush3.bf16.msra.mxu1 %v2059_v12 }
  0x2a   : > { %2001 = vset.pattern.permute.xlu1 %v3178_v43 }
  0x2b   : > { %1250 = vperm.xlu1 %2001, %v2251_v44   ;;  %1915 = vmatpush3.bf16.msra.mxu0 %v2055_v63 }
  0x2c   : > { %1916 = vmatprep.subr.bf16.mxu0 %v2056_v6 }
  0x2d   : > { %1875 = vmatmul.mubr.msk.bf16.gmra.mrb[8].mxu0 %vm470_vm0, %v428_v16 }
  0x2e   : > { %557 = vmatprep.mubr.bf16.mxu0 %v3182_v3 }
  0x2f   : > { %1258 = vperm.xlu1 %2001, %v2219_v32   ;;  %1917 = vmatpush3.bf16.msra.mxu0 %v2057_v7 }
  0x30   : > { %1918 = vmatprep.subr.bf16.mxu0 %v2058_v9 }
  0x33   : > { %2003 = vset.pattern.permute.xlu1 %v3180_v58  ;;  %1919 = vmatpush3.bf16.msra.mxu0 %v2059_v12 }
  0x34   : > { %1351 = vperm.xlu1 %2003, %v2251_v44  }
  0x35   : > { %1876 = vmatmul.mubr.msk.bf16.gmra.mrb[12].mxu0 %vm470_vm0, %v429_v19  ;;  %v2060_v19 = vld [vmem:[%s3171_s5 + $0x70] sm:$0xff]  }
  0x36   : > { %567 = vmatprep.mubr.bf16.mxu0 %v3182_v3  ;;  %1920 = vmatprep.subr.bf16.mxu0 %v2060_v19 }
  0x37   : > { %1978 = vmatprep.subr.bf16.mxu1 %v2060_v19  ;;  %1921 = vmatpush3.bf16.msra.mxu0 %v2061_v21  ;;  %v2418_v19 = vld [vmem:[%s2216_s20 + $0x48] sm:$0xff] }
  0x38   : > { %2004 = vset.pattern.permute.xlu1 %v3178_v43  ;;  %1986 = vmatpush3.bf16.msra.mxu1 %v2061_v21 }
  0x39   : > { %1262 = vperm.xlu1 %2004, %v2223_v33  }
  0x3d   : > { %1877 = vmatmul.mubr.msk.bf16.gmra.mrb[16].mxu0 %vm470_vm0, %v430_v22  ;;  %2005 = vset.pattern.permute.xlu1 %v3180_v58  ;;  %v2062_v22 = vld [vmem:[%s3171_s5 + $0x78] sm:$0xff]  }
  0x3e   : > { %577 = vmatprep.mubr.bf16.mxu0 %v3182_v3  ;;  %1359 = vperm.xlu1 %2005, %v2219_v32  }
  0x3f   : > { %1922 = vmatprep.subr.bf16.mxu0 %v2062_v22  ;;  %1979 = vmatprep.subr.bf16.mxu1 %v2062_v22 }
  0x40   : > { %1923 = vmatpush3.bf16.msra.mxu0 %v2063_v23  ;;  %1987 = vmatpush3.bf16.msra.mxu1 %v2063_v23  ;;  %v2422_v23 = vld [vmem:[%s2216_s20 + $0x60] sm:$0xff] }
  0x42   : > { %2006 = vset.pattern.permute.xlu1 %v3189_v20 }
  0x43   : > { %1456 = vperm.xlu1 %2006, %v2332_v18  }
  0x45   : > { %1878 = vmatmul.mubr.msk.bf16.gmra.mrb[20].mxu0 %vm470_vm0, %v431_v25  ;;  %v2352_v25 = vld [vmem:[%s2216_s20 + $0x20] sm:$0xff] }
  0x46   : > { %587 = vmatprep.mubr.bf16.mxu0 %v3182_v3 }
  0x47   : > { %2007 = vset.pattern.permute.xlu1 %v3178_v43 }
  0x48   : > { %1266 = vperm.xlu1 %2007, %v2352_v25  }
  0x4c   : > { %2008 = vset.pattern.permute.xlu1 %v3189_v20 }
  0x4d   : > { %1879 = vmatmul.mubr.msk.bf16.gmra.mrb[24].mxu0 %vm470_vm0, %v432_v28  ;;  %1460 = vperm.xlu1 %2008, %v2219_v32  }
  0x4e   : > { %597 = vmatprep.mubr.bf16.mxu0 %v3182_v3 }
  0x51   : > { %2009 = vset.pattern.permute.xlu1 %v3178_v43 }
  0x52   : > { %1270 = vperm.xlu1 %2009, %v2227_v34  }
  0x55   : > { %1880 = vmatmul.mubr.msk.bf16.gmra.mrb[28].mxu0 %vm470_vm0, %v433_v31 }
  0x56   : > { %2010 = vset.pattern.permute.xlu1 %v3189_v20 }
  0x57   : > { %1464 = vperm.xlu1 %2010, %v2223_v33  }
  0x5b   : > { %2011 = vset.pattern.permute.xlu1 %v3180_v58 }
  0x5c   : > { %1371 = vperm.xlu1 %2011, %v2227_v34  }
  0x60   : > { %2012 = vset.pattern.permute.xlu1 %v3189_v20 }
  0x61   : > { %1468 = vperm.xlu1 %2012, %v2352_v25  }
  0x65   : > { %2013 = vset.pattern.permute.xlu1 %v3180_v58 }
  0xf0   : > { %v2234_v36 = vpop.f32.mrb[0].mxu0 }
  0xf1   : > { %v2236_v37 = vpop.f32.mrb[1].mxu0 }
  0xf2   : > { %3213 = vst [vmem:[#allocation3_spill] sm:$0xff] %v2236_v37  ;;  %v2238_v38 = vpop.f32.mrb[2].mxu0 }
  0xf3   : > { %v610_v39 = vadd.f32 %v2238_v38, %v2234_v36  ;;  %v2242_v40 = vpop.f32.mrb[3].mxu0 }
  0xf4   : > { %3214 = vst [vmem:[#allocation4_spill] sm:$0xff] %v2242_v40  ;;  %v691_v41 = vadd.f32 %v2242_v40, %v2236_v37 }
  0xf8   : > { %v2258_v46 = vpop.f32.mrb[4].mxu0 }
  0xf9   : > { %v611_v48 = vadd.f32 %v610_v39, %v2258_v46  ;;  %v2264_v49 = vpop.f32.mrb[5].mxu0 }
  0xfa   : > { %3215 = vst [vmem:[#allocation5_spill] sm:$0xff] %v2264_v49  ;;  %v692_v51 = vadd.f32 %v691_v41, %v2264_v49  ;;  %v2271_v52 = vpop.f32.mrb[6].mxu0 }
  0xfb   : > { %v612_v53 = vadd.f32 %v611_v48, %v2271_v52  ;;  %v2274_v54 = vpop.f32.mrb[7].mxu0 }
  0xfc   : > { %3216 = vst [vmem:[#allocation6_spill] sm:$0xff] %v2274_v54  ;;  %v693_v55 = vadd.f32 %v692_v51, %v2274_v54 }
 0x100   : > { %v2285_v59 = vpop.f32.mrb[8].mxu0 }
 0x101   : > { %v613_v61 = vadd.f32 %v612_v53, %v2285_v59  ;;  %v2291_v62 = vpop.f32.mrb[9].mxu0 }
 0x102   : > { %3217 = vst [vmem:[#allocation7_spill] sm:$0xff] %v2291_v62  ;;  %v694_v0 = vadd.f32 %v693_v55, %v2291_v62  ;;  %v2297_v1 = vpop.f32.mrb[10].mxu0 }
 0x103   : > { %v614_v2 = vadd.f32 %v613_v61, %v2297_v1  ;;  %v2300_v4 = vpop.f32.mrb[11].mxu0 }
 0x104   : > { %3218 = vst [vmem:[#allocation8_spill] sm:$0xff] %v2300_v4  ;;  %v695_v5 = vadd.f32 %v694_v0, %v2300_v4 }
 0x108   : > { %v2311_v8 = vpop.f32.mrb[12].mxu0 }
 0x109   : > { %v615_v10 = vadd.f32 %v614_v2, %v2311_v8  ;;  %v2318_v11 = vpop.f32.mrb[13].mxu0  ;;  %v2397_v2 = vld [vmem:[%s2216_s20 + $0x30] sm:$0xff] }
 0x10a   : > { %3219 = vst [vmem:[#allocation9_spill] sm:$0xff] %v2318_v11  ;;  %v696_v13 = vadd.f32 %v695_v5, %v2318_v11  ;;  %v2325_v14 = vpop.f32.mrb[14].mxu0  ;;  %1274 = vperm.xlu0 %2002, %v2397_v2   ;;  %1375 = vperm.xlu1 %2013, %v2397_v2  }
 0x10b   : > { %3220 = vst [vmem:[#allocation10_spill] sm:$0xff] %v2325_v14  ;;  %v616_v15 = vadd.f32 %v615_v10, %v2325_v14  ;;  %v2328_v16 = vpop.f32.mrb[15].mxu0 }
 0x10c   : > { %3221 = vst [vmem:[#allocation11_spill] sm:$0xff] %v2328_v16  ;;  %v697_v17 = vadd.f32 %v696_v13, %v2328_v16 }
 0x10e   : > { %1278 = vperm.xlu0 %2002, %v2231_v35   ;;  %2014 = vset.pattern.permute.xlu1 %v3182_v3 }
 0x10f   : > { %1002 = vperm.xlu1 %2014, %v2418_v19  }
 0x110   : > { %v2349_v24 = vpop.f32.mrb[16].mxu0 }
 0x111   : > { %3222 = vst [vmem:[#allocation12_spill] sm:$0xff] %v2349_v24  ;;  %v617_v26 = vadd.f32 %v616_v15, %v2349_v24  ;;  %v2355_v27 = vpop.f32.mrb[17].mxu0 }
 0x112   : > { %3223 = vst [vmem:[#allocation13_spill] sm:$0xff] %v2355_v27  ;;  %v698_v28 = vadd.f32 %v697_v17, %v2355_v27  ;;  %v2358_v29 = vpop.f32.mrb[18].mxu0  ;;  %1286 = vperm.xlu0 %2002, %v2418_v19  }
 0x113   : > { %3224 = vst [vmem:[#allocation14_spill] sm:$0xff] %v2358_v29  ;;  %v618_v30 = vadd.f32 %v617_v26, %v2358_v29  ;;  %v2362_v31 = vpop.f32.mrb[19].mxu0  ;;  %2015 = vset.pattern.permute.xlu1 %v3178_v43 }
 0x114   : > { %3225 = vst [vmem:[#allocation15_spill] sm:$0xff] %v2362_v31  ;;  %v699_v39 = vadd.f32 %v698_v28, %v2362_v31 }
 0x116   : > { %1298 = vperm.xlu0 %2002, %v2422_v23  }
 0x118   : > { %v2367_v41 = vpop.f32.mrb[20].mxu0 }
 0x119   : > { %3226 = vst [vmem:[#allocation16_spill] sm:$0xff] %v2367_v41  ;;  %v619_v42 = vadd.f32 %v618_v30, %v2367_v41  ;;  %v2371_v45 = vpop.f32.mrb[21].mxu0 }
 0x11a   : > { %3227 = vst [vmem:[#allocation17_spill] sm:$0xff] %v2371_v45  ;;  %v700_v47 = vadd.f32 %v699_v39, %v2371_v45  ;;  %v2374_v48 = vpop.f32.mrb[22].mxu0  ;;  %2026 = vset.pattern.permute.xlu0 %v3182_v3 }
 0x11b   : > { %3228 = vst [vmem:[#allocation18_spill] sm:$0xff] %v2374_v48  ;;  %v620_v50 = vadd.f32 %v619_v42, %v2374_v48  ;;  %v2377_v51 = vpop.f32.mrb[23].mxu0  ;;  %957 = vperm.xlu0 %2026, %v2251_v44  }
 0x11c   : > { %3229 = vst [vmem:[#allocation19_spill] sm:$0xff] %v2377_v51  ;;  %v701_v53 = vadd.f32 %v700_v47, %v2377_v51 }
 0x11f   : > { %962 = vperm.xlu0 %2026, %v2332_v18  }
 0x120   : > { %v2382_v32 = vpop.f32.mrb[24].mxu0 }
 0x121   : > { %3230 = vst [vmem:[#allocation20_spill] sm:$0xff] %v2382_v32  ;;  %v621_v55 = vadd.f32 %v620_v50, %v2382_v32  ;;  %v2385_v56 = vpop.f32.mrb[25].mxu0 }
 0x122   : > { %3231 = vst [vmem:[#allocation21_spill] sm:$0xff] %v2385_v56  ;;  %v702_v57 = vadd.f32 %v701_v53, %v2385_v56  ;;  %v2389_v60 = vpop.f32.mrb[26].mxu0 }
 0x123   : > { %3232 = vst [vmem:[#allocation22_spill] sm:$0xff] %v2389_v60  ;;  %v622_v61 = vadd.f32 %v621_v55, %v2389_v60  ;;  %v2393_v63 = vpop.f32.mrb[27].mxu0  ;;  %v2432_v55 = vld [vmem:[%s2216_s20 + $0x40] sm:$0xff]  ;;  %977 = vperm.xlu0 %2026, %v2352_v25  }
 0x124   : > { %3233 = vst [vmem:[#allocation23_spill] sm:$0xff] %v2393_v63  ;;  %v703_v0 = vadd.f32 %v702_v57, %v2393_v63  ;;  %1282 = vperm.xlu1 %2015, %v2432_v55  }
 0x127   : > { %987 = vperm.xlu0 %2026, %v2397_v2  }
 0x128   : > { %v2402_v5 = vpop.f32.mrb[28].mxu0  ;;  %2016 = vset.pattern.permute.xlu1 %v3189_v20 }
 0x129   : > { %3234 = vst [vmem:[#allocation24_spill] sm:$0xff] %v2402_v5  ;;  %v623_v6 = vadd.f32 %v622_v61, %v2402_v5  ;;  %v2405_v7 = vpop.f32.mrb[29].mxu0  ;;  %1476 = vperm.xlu1 %2016, %v2397_v2  }
 0x12a   : > { %3235 = vst [vmem:[#allocation25_spill] sm:$0xff] %v2405_v7  ;;  %v704_v9 = vadd.f32 %v703_v0, %v2405_v7  ;;  %v2408_v10 = vpop.f32.mrb[30].mxu0 }
 0x12b   : > { %v624_v12 = vadd.f32 %v623_v6, %v2408_v10  ;;  %v2412_v13 = vpop.f32.mrb[31].mxu0  ;;  %997 = vperm.xlu0 %2026, %v2432_v55  }
 0x12c   : > { %3236 = vst [vmem:[#allocation26_spill] sm:$0xff] %v2412_v13  ;;  %v705_v15 = vadd.f32 %v704_v9, %v2412_v13 }
 0x12d   : > { %v625_v17 = vrot.slane %v624_v12, 4 }
 0x12e   : > { %v706_v21 = vrot.slane %v705_v15, 4 }
 0x12f   : > { %v626_v22 = vadd.f32 %v625_v17, %v624_v12 }
 0x130   : > { %v707_v26 = vadd.f32 %v706_v21, %v705_v15 }
 0x131   : > { %v627_v28 = vrot.slane %v626_v22, 2 }
 0x132   : > { %v708_v30 = vrot.slane %v707_v26, 2 }
 0x133   : > { %v628_v39 = vadd.f32 %v627_v28, %v626_v22 }
 0x134   : > { %v709_v42 = vadd.f32 %v708_v30, %v707_v26 }
 0x135   : > { %v629_v47 = vrot.slane %v628_v39, 1 }
 0x136   : > { %v710_v50 = vrot.slane %v709_v42, 1 }
 0x137   : > { %v630_v53 = vadd.f32 %v629_v47, %v628_v39 }
 0x138   : > { %v711_v61 = vadd.f32 %v710_v50, %v709_v42 }
 0x139   : > { %v2434_v57 = vmul.f32 0.0078125, %v630_v53 }
 0x13a   : > { %v2483_v3 = vmul.f32 0.0078125, %v711_v61  ;;  %v2495_v61 = vld [vmem:[%s2216_s20 + $0x50] sm:$0xff] }
 0x13b   : > { %v632_v0 = vsub.f32 %v2234_v36, %v2434_v57  ;;  %v633_v6 = vsub.f32 %v2238_v38, %v2434_v57  ;;  %v634_v9 = vsub.f32 %v2258_v46, %v2434_v57  ;;  %v635_v12 = vsub.f32 %v2271_v52, %v2434_v57 }
 0x13c   : > { %v636_v15 = vsub.f32 %v2285_v59, %v2434_v57  ;;  %v637_v17 = vsub.f32 %v2297_v1, %v2434_v57  ;;  %v638_v21 = vsub.f32 %v2311_v8, %v2434_v57  ;;  %v639_v22 = vsub.f32 %v2325_v14, %v2434_v57  ;;  %3237 = vst [vmem:[#allocation27_spill] sm:$0xff] %v2483_v3 }
 0x13d   : > { %v640_v26 = vsub.f32 %v2349_v24, %v2434_v57  ;;  %v641_v28 = vsub.f32 %v2358_v29, %v2434_v57  ;;  %v2461_v30 = vsub.f32 %v2367_v41, %v2434_v57  ;;  %v2465_v39 = vsub.f32 %v2374_v48, %v2434_v57 }
 0x13e   : > { %v2469_v42 = vsub.f32 %v2382_v32, %v2434_v57  ;;  %v2473_v47 = vsub.f32 %v2389_v60, %v2434_v57  ;;  %v2477_v50 = vsub.f32 %v2402_v5, %v2434_v57  ;;  %v2481_v53 = vsub.f32 %v2408_v10, %v2434_v57 }
 0x13f   : > { %v648_v43 = vmul.f32 %v632_v0, %v632_v0  ;;  %v649_v58 = vmul.f32 %v633_v6, %v633_v6  ;;  %v650_v60 = vmul.f32 %v634_v9, %v634_v9  ;;  %v651_v32 = vmul.f32 %v635_v12, %v635_v12 }
 0x140   : > { %v713_v5 = vsub.f32 %v2236_v37, %v2483_v3  ;;  %v714_v41 = vsub.f32 %v2242_v40, %v2483_v3  ;;  %v715_v0 = vsub.f32 %v2264_v49, %v2483_v3  ;;  %v716_v6 = vsub.f32 %v2274_v54, %v2483_v3  ;;  %v2541_v37 = vld [vmem:[%s2216_s20 + $0x58] sm:$0xff] }
 0x141   : > { %v664_v48 = vadd.f32 %v649_v58, %v648_v43  ;;  %v717_v20 = vsub.f32 %v2291_v62, %v2483_v3  ;;  %v718_v43 = vsub.f32 %v2300_v4, %v2483_v3  ;;  %v719_v58 = vsub.f32 %v2318_v11, %v2483_v3  ;;  %1012 = vperm.xlu0 %2026, %v2541_v37  }
 0x142   : > { %v3238_v9 = vmov 0   ;;  %v720_v49 = vsub.f32 %v2328_v16, %v2483_v3  ;;  %v721_v40 = vsub.f32 %v2355_v27, %v2483_v3  ;;  %v722_v54 = vsub.f32 %v2362_v31, %v2483_v3 }
 0x143   : > { %2017 = vset.pattern.permute.xlu1 %v3238_v9  ;;  %v665_v12 = vadd.f32 %v664_v48, %v650_v60  ;;  %v2515_v4 = vsub.f32 %v2371_v45, %v2483_v3  ;;  %v2519_v11 = vsub.f32 %v2377_v51, %v2483_v3  ;;  %v2523_v48 = vsub.f32 %v2385_v56, %v2483_v3 }
 0x144   : > { %v2527_v60 = vsub.f32 %v2393_v63, %v2483_v3  ;;  %1007 = vperm.xlu1 %2017, %v2495_v61   ;;  %v652_v2 = vmul.f32 %v636_v15, %v636_v15  ;;  %v2532_v45 = vsub.f32 %v2405_v7, %v2483_v3  ;;  %v2536_v51 = vsub.f32 %v2412_v13, %v2483_v3 }
 0x145   : > { %v666_v31 = vadd.f32 %v665_v12, %v651_v32  ;;  %v729_v27 = vmul.f32 %v713_v5, %v713_v5  ;;  %v730_v16 = vmul.f32 %v714_v41, %v714_v41  ;;  %v653_v56 = vmul.f32 %v637_v17, %v637_v17  ;;  %v2546_v17 = vld [vmem:[%s2216_s20 + $0x70] sm:$0xff] }
 0x146   : > { %v3239_v63 = vmov 2   ;;  %v654_v32 = vmul.f32 %v638_v21, %v638_v21  ;;  %v731_v12 = vmul.f32 %v715_v0, %v715_v0  ;;  %v655_v29 = vmul.f32 %v639_v22, %v639_v22  ;;  %1027 = vperm.xlu0 %2026, %v2546_v17  }
 0x147   : > { %v667_v62 = vadd.f32 %v666_v31, %v652_v2  ;;  %v745_v7 = vadd.f32 %v730_v16, %v729_v27  ;;  %v732_v41 = vmul.f32 %v716_v6, %v716_v6  ;;  %v656_v31 = vmul.f32 %v640_v26, %v640_v26 }
 0x148   : > { %2018 = vset.pattern.permute.xlu1 %v3239_v63  ;;  %v3240_v3 = vmov 3   ;;  %v733_v24 = vmul.f32 %v717_v20, %v717_v20  ;;  %v734_v16 = vmul.f32 %v718_v43, %v718_v43  ;;  %v658_v21 = vmul.f32 %v2461_v30, %v2461_v30 }
 0x149   : > { %v668_v15 = vadd.f32 %v667_v62, %v653_v56  ;;  %1383 = vperm.xlu1 %2018, %v2432_v55   ;;  %v746_v5 = vadd.f32 %v745_v7, %v731_v12  ;;  %v657_v62 = vmul.f32 %v641_v28, %v641_v28  ;;  %v735_v22 = vmul.f32 %v719_v58, %v719_v58 }
 0x14a   : > { %v3241_v26 = vmov 1   ;;  %v659_v20 = vmul.f32 %v2465_v39, %v2465_v39  ;;  %2029 = vset.pattern.permute.xlu0 %v3240_v3  ;;  %v737_v30 = vmul.f32 %v721_v40, %v721_v40  ;;  %v661_v43 = vmul.f32 %v2473_v47, %v2473_v47 }
 0x14b   : > { %v669_v13 = vadd.f32 %v668_v15, %v654_v32  ;;  %v747_v14 = vadd.f32 %v746_v5, %v732_v41  ;;  %1452 = vperm.xlu0 %2029, %v2251_v44   ;;  %v738_v39 = vmul.f32 %v722_v54, %v722_v54  ;;  %v662_v44 = vmul.f32 %v2477_v50, %v2477_v50 }
 0x14c   : > { %v739_v40 = vmul.f32 %v2515_v4, %v2515_v4  ;;  %v663_v47 = vmul.f32 %v2481_v53, %v2481_v53  ;;  %v740_v54 = vmul.f32 %v2519_v11, %v2519_v11  ;;  %v741_v50 = vmul.f32 %v2523_v48, %v2523_v48 }
 0x14d   : > { %v670_v2 = vadd.f32 %v669_v13, %v655_v29  ;;  %2019 = vset.pattern.permute.xlu1 %v3240_v3  ;;  %v748_v27 = vadd.f32 %v747_v14, %v733_v24  ;;  %v736_v13 = vmul.f32 %v720_v49, %v720_v49  ;;  %v660_v14 = vmul.f32 %v2469_v42, %v2469_v42 }
 0x14e   : > { %1480 = vperm.xlu1 %2019, %v2231_v35   ;;  %v742_v53 = vmul.f32 %v2527_v60, %v2527_v60  ;;  %v744_v48 = vmul.f32 %v2536_v51, %v2536_v51 }
 0x14f   : > { %v671_v56 = vadd.f32 %v670_v2, %v656_v31  ;;  %v749_v0 = vadd.f32 %v748_v27, %v734_v16  ;;  %1472 = vperm.xlu0 %2029, %v2227_v34  }
 0x151   : > { %v672_v7 = vadd.f32 %v671_v56, %v657_v62  ;;  %v750_v28 = vadd.f32 %v749_v0, %v735_v22 }
 0x152   : > { %2020 = vset.pattern.permute.xlu1 %v3241_v26 }
 0x153   : > { %v673_v29 = vadd.f32 %v672_v7, %v658_v21  ;;  %1290 = vperm.xlu1 %2020, %v2495_v61   ;;  %v751_v6 = vadd.f32 %v750_v28, %v736_v13  ;;  %1484 = vperm.xlu0 %2029, %v2432_v55   ;;  %v743_v55 = vmul.f32 %v2532_v45, %v2532_v45  ;;  %v2594_v21 = vld [vmem:[%s2216_s20 + $0x68] sm:$0xff] }
 0x155   : > { %v674_v24 = vadd.f32 %v673_v29, %v659_v20  ;;  %v752_v32 = vadd.f32 %v751_v6, %v737_v30  ;;  %v778_v20 = vlaneseq }
 0x157   : > { %v675_v58 = vadd.f32 %v674_v24, %v660_v14  ;;  %2021 = vset.pattern.permute.xlu1 %v3239_v63  ;;  %v753_v42 = vadd.f32 %v752_v32, %v738_v39  ;;  %1496 = vperm.xlu0 %2029, %v2541_v37   ;;  %v779_v29 = vshrl.u32 %v778_v20, 7 }
 0x158   : > { %1387 = vperm.xlu1 %2021, %v2418_v19  }
 0x159   : > { %v676_v49 = vadd.f32 %v675_v58, %v661_v43  ;;  %v754_v12 = vadd.f32 %v753_v42, %v739_v40  ;;  %v2608_v14 = vsub.s32 0, %v779_v29 }
 0x15b   : > { %v677_v15 = vadd.f32 %v676_v49, %v662_v44  ;;  %v755_v4 = vadd.f32 %v754_v12, %v740_v54  ;;  %2032 = vset.pattern.permute.xlu0 %v3239_v63  ;;  %3242 = vst [vmem:[#allocation28_spill] sm:$0xff] %v2608_v14  ;;  %v2628_v49 = vld [vmem:[%s2216_s20 + $0x78] sm:$0xff] }
 0x15c   : > { %2022 = vset.pattern.permute.xlu1 %v3238_v9  ;;  %1355 = vperm.xlu0 %2032, %v2332_v18   ;;  %v3247_v12 = vld [vmem:[#allocation18_spill] sm:$0xff] }
 0x15d   : > { %v678_v34 = vadd.f32 %v677_v15, %v663_v47  ;;  %1017 = vperm.xlu1 %2022, %v2422_v23   ;;  %v756_v5 = vadd.f32 %v755_v4, %v741_v50  ;;  %v3243_v47 = vld [vmem:[#allocation10_spill] sm:$0xff]  ;;  %v3244_v15 = vld [vmem:[#allocation12_spill] sm:$0xff] }
 0x15f   : > { %v679_v41 = vrot.slane %v678_v34, 4  ;;  %v757_v31 = vadd.f32 %v756_v5, %v742_v53 }
 0x160   : > { %1363 = vperm.xlu0 %2032, %v2223_v33  }
 0x161   : > { %v680_v11 = vadd.f32 %v679_v41, %v678_v34  ;;  %2023 = vset.pattern.permute.xlu1 %v3241_v26  ;;  %v758_v62 = vadd.f32 %v757_v31, %v743_v55  ;;  %v3248_v34 = vld [vmem:[#allocation20_spill] sm:$0xff] }
 0x162   : > { %1294 = vperm.xlu1 %2023, %v2541_v37  }
 0x163   : > { %v681_v2 = vrot.slane %v680_v11, 2  ;;  %v759_v56 = vadd.f32 %v758_v62, %v744_v48 }
 0x164   : > { %1367 = vperm.xlu0 %2032, %v2352_v25   ;;  %v608_v25 = vld [vmem:[%s3169_s3] sm:$0x3] }
 0x165   : > { %v682_v60 = vadd.f32 %v681_v2, %v680_v11  ;;  %v760_v45 = vrot.slane %v759_v56, 4  ;;  %v770_v6 = vrot.slane %v608_v25, 1 }
 0x166   : > { %2024 = vset.pattern.permute.xlu1 %v3240_v3 }
 0x167   : > { %v683_v16 = vrot.slane %v682_v60, 1  ;;  %1488 = vperm.xlu1 %2024, %v2418_v19   ;;  %v761_v7 = vadd.f32 %v760_v45, %v759_v56  ;;  %v3249_v45 = vld [vmem:[#allocation27_spill] sm:$0xff] }
 0x168   : > { %1379 = vperm.xlu0 %2032, %v2231_v35   ;;  %v609_v35 = vld [vmem:[%s3170_s4] sm:$0x3] }
 0x169   : > { %v684_v27 = vadd.f32 %v683_v16, %v682_v60  ;;  %v762_v22 = vrot.slane %v761_v7, 2  ;;  %v775_v43 = vrot.slane %v609_v35, 1 }
 0x16b   : > { %v685_v51 = vmul.f32 0.0078125, %v684_v27  ;;  %2025 = vset.pattern.permute.xlu1 %v3238_v9  ;;  %v763_v0 = vadd.f32 %v762_v22, %v761_v7 }
 0x16c   : > { %1022 = vperm.xlu1 %2025, %v2594_v21   ;;  %1391 = vperm.xlu0 %2032, %v2495_v61  }
 0x16d   : > { %v686_v18 = vadd.f32 1e-05, %v685_v51  ;;  %v764_v19 = vrot.slane %v763_v0, 1 }
 0x16f   : > { %2064 = vrsqrt.f32 %v686_v18  ;;  %v765_v33 = vadd.f32 %v764_v19, %v763_v0 }
 0x170   : > { %2027 = vset.pattern.permute.xlu1 %v3239_v63  ;;  %1403 = vperm.xlu0 %2032, %v2594_v21  }
 0x171   : > { %1395 = vperm.xlu1 %2027, %v2541_v37   ;;  %v766_v13 = vmul.f32 0.0078125, %v765_v33 }
 0x173   : > { %v767_v28 = vadd.f32 1e-05, %v766_v13  ;;  %v3251_v13 = vld [vmem:[#allocation3_spill] sm:$0xff] }
 0x174   : > { %1407 = vperm.xlu0 %2032, %v2546_v17  }
 0x175   : > { %2028 = vset.pattern.permute.xlu1 %v3240_v3  ;;  %2066 = vrsqrt.f32 %v767_v28 }
 0x176   : > { %1492 = vperm.xlu1 %2028, %v2495_v61  }
 0x178   : > { %1411 = vperm.xlu0 %2032, %v2628_v49  }
 0x179   : > { %v2065_v37 = vpop.eup %2064 }
 0x17a   : > { %v688_v24 = vmul.f32 %v2065_v37, %v608_v25  ;;  %2030 = vset.pattern.permute.xlu1 %v3241_v26  ;;  %v3252_v25 = vld [vmem:[#allocation4_spill] sm:$0xff] }
 0x17b   : > { %1302 = vperm.xlu1 %2030, %v2594_v21  }
 0x17c   : > { %v689_v61 = vmul.f32 %v688_v24, %v2434_v57  ;;  %v2618_v30 = vrot.slane %v688_v24, %v2608_v14  ;;  %2038 = vset.pattern.permute.xlu0 %v3240_v3 }
 0x17d   : > { %1512 = vperm.xlu0 %2038, %v2628_v49  }
 0x17e   : > { %v690_v58 = vsub.f32 %v609_v35, %v689_v61  ;;  %v816_v39 = vmul.f32 %v2618_v30, %v2408_v10  ;;  %v786_v32 = vmul.f32 %v2618_v30, %v2234_v36  ;;  %v788_v44 = vmul.f32 %v2618_v30, %v2238_v38  ;;  %v3253_v35 = vld [vmem:[#allocation5_spill] sm:$0xff]  ;;  %v3254_v61 = vld [vmem:[#allocation6_spill] sm:$0xff] }
 0x17f   : > { %v790_v57 = vmul.f32 %v2618_v30, %v2258_v46  ;;  %v792_v40 = vmul.f32 %v2618_v30, %v2271_v52  ;;  %v794_v42 = vmul.f32 %v2618_v30, %v2285_v59  ;;  %v796_v10 = vmul.f32 %v2618_v30, %v2297_v1  ;;  %2031 = vset.pattern.permute.xlu1 %v3239_v63  ;;  %v3245_v59 = vld [vmem:[#allocation14_spill] sm:$0xff]  ;;  %v3246_v63 = vld [vmem:[#allocation16_spill] sm:$0xff]  ;;  %v2067_v4 = vpop.eup %2066 }
 0x180   : > { %v2640_v36 = vrot.slane %v690_v58, %v2608_v14  ;;  %v798_v38 = vmul.f32 %v2618_v30, %v2311_v8  ;;  %v800_v46 = vmul.f32 %v2618_v30, %v3243_v47  ;;  %v2648_v52 = vmul.f32 %v2618_v30, %v3244_v15  ;;  %1399 = vperm.xlu1 %2031, %v2422_v23   ;;  %v3259_v15 = vld [vmem:[#allocation13_spill] sm:$0xff] }
 0x181   : > { %v2653_v1 = vmul.f32 %v2618_v30, %v3245_v59  ;;  %v2657_v54 = vmul.f32 %v2618_v30, %v3246_v63  ;;  %v2661_v8 = vmul.f32 %v2618_v30, %v3247_v12  ;;  %v2665_v50 = vmul.f32 %v2618_v30, %v3248_v34  ;;  %v3260_v63 = vld [vmem:[#allocation15_spill] sm:$0xff] }
 0x182   : > { %v2669_v41 = vadd.f32 %v2640_v36, %v816_v39  ;;  %v826_v53 = vadd.f32 %v2640_v36, %v786_v32  ;;  %v828_v5 = vadd.f32 %v2640_v36, %v788_v44  ;;  %v830_v11 = vadd.f32 %v2640_v36, %v790_v57  ;;  %v3255_v39 = vld [vmem:[#allocation7_spill] sm:$0xff]  ;;  %v3256_v44 = vld [vmem:[#allocation8_spill] sm:$0xff] }
 0x183   : > { %v772_v55 = vmul.f32 %v2067_v4, %v770_v6  ;;  %v832_v31 = vadd.f32 %v2640_v36, %v792_v40  ;;  %v834_v2 = vadd.f32 %v2640_v36, %v794_v42  ;;  %v836_v48 = vadd.f32 %v2640_v36, %v796_v10  ;;  %v3257_v42 = vld [vmem:[#allocation9_spill] sm:$0xff] }
 0x184   : > { %v858_v62 = vmax.f32 %v826_v53, 0.0  ;;  %v860_v60 = vmax.f32 %v828_v5, 0.0  ;;  %v862_v56 = vmax.f32 %v830_v11, 0.0  ;;  %v838_v16 = vadd.f32 %v2640_v36, %v798_v38  ;;  %2033 = vset.pattern.permute.xlu1 %v3238_v9  ;;  %v3250_v9 = vld [vmem:[#allocation26_spill] sm:$0xff]  ;;  %v3258_v38 = vld [vmem:[#allocation11_spill] sm:$0xff] }
 0x185   : > { %v773_v27 = vmul.f32 %v772_v55, %v3249_v45  ;;  %v2681_v7 = vrot.slane %v772_v55, %v2608_v14  ;;  %v864_v51 = vmax.f32 %v832_v31, 0.0  ;;  %v866_v22 = vmax.f32 %v834_v2, 0.0  ;;  %1032 = vperm.xlu1 %2033, %v2628_v49  }
 0x186   : > { %v890_v18 = vpack.c.bf16 %v860_v60, %v858_v62  ;;  %v868_v0 = vmax.f32 %v836_v48, 0.0  ;;  %v840_v20 = vadd.f32 %v2640_v36, %v800_v46  ;;  %v870_v19 = vmax.f32 %v838_v16, 0.0 }
 0x187   : > { %v777_v33 = vsub.f32 %v775_v43, %v773_v27  ;;  %v817_v29 = vmul.f32 %v2681_v7, %v3250_v9  ;;  %v787_v28 = vmul.f32 %v2681_v7, %v3251_v13  ;;  %v789_v37 = vmul.f32 %v2681_v7, %v3252_v25 }
 0x188   : > { %v791_v24 = vmul.f32 %v2681_v7, %v3253_v35  ;;  %v793_v6 = vmul.f32 %v2681_v7, %v3254_v61  ;;  %v892_v58 = vpack.c.bf16 %v864_v51, %v862_v56  ;;  %v795_v32 = vmul.f32 %v2681_v7, %v3255_v39 }
 0x189   : > { %v2700_v43 = vrot.slane %v777_v33, %v2608_v14  ;;  %v797_v57 = vmul.f32 %v2681_v7, %v3256_v44  ;;  %v2704_v40 = vpack.c.bf16 %v868_v0, %v866_v22  ;;  %v799_v10 = vmul.f32 %v2681_v7, %v3257_v42  ;;  %2034 = vset.pattern.permute.xlu1 %v3241_v26 }
 0x18a   : > { %v801_v47 = vmul.f32 %v2681_v7, %v3258_v38  ;;  %v872_v46 = vmax.f32 %v840_v20, 0.0  ;;  %v803_v59 = vmul.f32 %v2681_v7, %v3259_v15  ;;  %v805_v12 = vmul.f32 %v2681_v7, %v3260_v63  ;;  %1306 = vperm.xlu1 %2034, %v2546_v17  }
 0x18b   : > { %v2717_v34 = vadd.f32 %v2700_v43, %v817_v29  ;;  %v827_v4 = vadd.f32 %v2700_v43, %v787_v28  ;;  %v829_v53 = vadd.f32 %v2700_v43, %v789_v37  ;;  %v831_v5 = vadd.f32 %v2700_v43, %v791_v24  ;;  %v3261_v24 = vld [vmem:[#allocation17_spill] sm:$0xff] }
 0x18c   : > { %v833_v11 = vadd.f32 %v2700_v43, %v793_v6  ;;  %v835_v55 = vadd.f32 %v2700_v43, %v795_v32  ;;  %v837_v31 = vadd.f32 %v2700_v43, %v797_v57  ;;  %v839_v2 = vadd.f32 %v2700_v43, %v799_v10  ;;  %v3262_v6 = vld [vmem:[#allocation19_spill] sm:$0xff]  ;;  %v3263_v57 = vld [vmem:[#allocation21_spill] sm:$0xff] }
 0x18d   : > { %v859_v48 = vmax.f32 %v827_v4, 0.0  ;;  %v861_v62 = vmax.f32 %v829_v53, 0.0  ;;  %v863_v60 = vmax.f32 %v831_v5, 0.0  ;;  %v841_v56 = vadd.f32 %v2700_v43, %v801_v47  ;;  %v3264_v47 = vld [vmem:[#allocation23_spill] sm:$0xff] }
 0x18e   : > { %v865_v16 = vmax.f32 %v833_v11, 0.0  ;;  %v867_v45 = vmax.f32 %v835_v55, 0.0  ;;  %v869_v27 = vmax.f32 %v837_v31, 0.0  ;;  %v871_v51 = vmax.f32 %v839_v2, 0.0  ;;  %2035 = vset.pattern.permute.xlu1 %v3240_v3  ;;  %v3266_v11 = vld [vmem:[#allocation25_spill] sm:$0xff] }
 0x18f   : > { %v891_v22 = vpack.c.bf16 %v861_v62, %v859_v48  ;;  %v873_v0 = vmax.f32 %v841_v56, 0.0  ;;  %v896_v20 = vpack.c.bf16 %v872_v46, %v870_v19  ;;  %v843_v33 = vadd.f32 %v2700_v43, %v803_v59  ;;  %1500 = vperm.xlu1 %2035, %v2422_v23   ;;  %v3267_v56 = vld [vmem:[#allocation24_spill] sm:$0xff] }
 0x190   : > { %v893_v9 = vpack.c.bf16 %v865_v16, %v863_v60  ;;  %v895_v29 = vpack.c.bf16 %v869_v27, %v867_v45  ;;  %v845_v13 = vadd.f32 %v2700_v43, %v805_v12  ;;  %v842_v28 = vadd.f32 %v2640_v36, %v2648_v52  ;;  %v3265_v12 = vld [vmem:[#allocation22_spill] sm:$0xff] }
 0x191   : > { %1183 = vmatprep.mubr.bf16.mxu0 %v891_v22  ;;  %v897_v25 = vpack.c.bf16 %v873_v0, %v871_v51  ;;  %v875_v37 = vmax.f32 %v843_v33, 0.0  ;;  %v844_v35 = vadd.f32 %v2640_v36, %v2653_v1  ;;  %v807_v19 = vmul.f32 %v2681_v7, %v3261_v24 }
 0x192   : > { %1191 = vmatprep.mubr.bf16.mxu1 %v893_v9  ;;  %1184 = vmatmul.mubr.bf16.vlgmr.msra.gmra.mrb[32].mxu0 %v890_v18  ;;  %v877_v61 = vmax.f32 %v845_v13, 0.0  ;;  %v874_v23 = vmax.f32 %v842_v28, 0.0  ;;  %v809_v39 = vmul.f32 %v2681_v7, %v3262_v6  ;;  %v846_v32 = vadd.f32 %v2640_v36, %v2657_v54 }
 0x193   : > { %1192 = vmatmul.mubr.bf16.vlgmr.msra.gmra.mrb[0].mxu1 %v892_v58  ;;  %v876_v52 = vmax.f32 %v844_v35, 0.0  ;;  %v847_v44 = vadd.f32 %v2700_v43, %v807_v19  ;;  %v848_v1 = vadd.f32 %v2640_v36, %v2661_v8  ;;  %v811_v42 = vmul.f32 %v2681_v7, %v3263_v57  ;;  %2036 = vset.pattern.permute.xlu1 %v3241_v26 }
 0x194   : > { %1199 = vmatprep.mubr.bf16.mxu1 %v895_v29  ;;  %v899_v18 = vpack.c.bf16 %v877_v61, %v875_v37  ;;  %v849_v10 = vadd.f32 %v2700_v43, %v809_v39  ;;  %v878_v38 = vmax.f32 %v846_v32, 0.0  ;;  %v813_v54 = vmul.f32 %v2681_v7, %v3264_v47  ;;  %1310 = vperm.xlu1 %2036, %v2628_v49  }
 0x195   : > { %v898_v58 = vpack.c.bf16 %v876_v52, %v874_v23  ;;  %v879_v46 = vmax.f32 %v847_v44, 0.0  ;;  %v880_v15 = vmax.f32 %v848_v1, 0.0  ;;  %v851_v8 = vadd.f32 %v2700_v43, %v811_v42 }
 0x196   : > { %v881_v59 = vmax.f32 %v849_v10, 0.0  ;;  %v853_v63 = vadd.f32 %v2700_v43, %v813_v54  ;;  %v812_v26 = vmul.f32 %v2618_v30, %v3265_v12  ;;  %v850_v4 = vadd.f32 %v2640_v36, %v2665_v50 }
 0x197   : > { %v900_v53 = vpack.c.bf16 %v880_v15, %v878_v38  ;;  %v883_v5 = vmax.f32 %v851_v8, 0.0  ;;  %v815_v55 = vmul.f32 %v2681_v7, %v3266_v11  ;;  %v889_v60 = vmax.f32 %v2717_v34, 0.0 }
 0x198   : > { %v901_v49 = vpack.c.bf16 %v881_v59, %v879_v46  ;;  %v885_v31 = vmax.f32 %v853_v63, 0.0  ;;  %v852_v2 = vadd.f32 %v2640_v36, %v812_v26  ;;  %v882_v48 = vmax.f32 %v850_v4, 0.0  ;;  %2037 = vset.pattern.permute.xlu1 %v3240_v3 }
 0x199   : > { %v855_v62 = vadd.f32 %v2700_v43, %v815_v55  ;;  %v814_v16 = vmul.f32 %v2618_v30, %v3267_v56  ;;  %1504 = vperm.xlu1 %2037, %v2594_v21   ;;  %v888_v51 = vmax.f32 %v2669_v41, 0.0  ;;  %v968_v21 = vpop.permute.xlu1 %967  ;;  %v2857_v56 = vld [vmem:[%s3172_s6 + $0x2] ss:$0 sm:$0xff] }
 0x19a   : > { %v903_v50 = vpack.c.bf16 %v885_v31, %v883_v5  ;;  %v884_v45 = vmax.f32 %v852_v2, 0.0  ;;  %v2850_v31 = vld [vmem:[%s3172_s6 + $0x1] ss:$0 sm:$0xff] }
 0x19b   : > { %1200 = vmatmul.mubr.bf16.gmra.mrb[4].mxu1 %v2704_v40  ;;  %v887_v7 = vmax.f32 %v855_v62, 0.0  ;;  %v854_v27 = vadd.f32 %v2640_v36, %v814_v16 }
 0x19c   : > { %1207 = vmatprep.mubr.bf16.mxu1 %v897_v25  ;;  %v902_v3 = vpack.c.bf16 %v884_v45, %v882_v48  ;;  %v1255_v25 = vpop.permute.xlu0 %1254 }
 0x19d   : > { %v905_v22 = vpack.c.bf16 %v889_v60, %v887_v7  ;;  %v886_v43 = vmax.f32 %v854_v27, 0.0  ;;  %1508 = vperm.xlu1 %2037, %v2546_v17   ;;  %v973_v30 = vpop.permute.xlu1 %972 }
 0x19f   : > { %v904_v34 = vpack.c.bf16 %v888_v51, %v886_v43 }
 0x1a0   : > { %v2786_v35 = vpop.permute.xlu0 %1274 }
 0x1a1   : > { %v2770_v36 = vpop.permute.xlu1 %982 }
 0x1a3   : > { %1208 = vmatmul.mubr.bf16.gmra.mrb[8].mxu1 %v896_v20 }
 0x1a4   : > { %1215 = vmatprep.mubr.bf16.mxu1 %v899_v18  ;;  %v2790_v19 = vpop.permute.xlu0 %1278 }
 0x1a5   : > { %v2772_v41 = vpop.permute.xlu1 %992 }
 0x1a8   : > { %v2794_v23 = vpop.permute.xlu0 %1286 }
 0x1a9   : > { %v1251_v40 = vpop.permute.xlu1 %1250 }
 0x1ab   : > { %1216 = vmatmul.mubr.bf16.gmra.mrb[12].mxu1 %v898_v58 }
 0x1ac   : > { %1223 = vmatprep.mubr.bf16.mxu1 %v901_v49  ;;  %v2798_v39 = vpop.permute.xlu0 %1298  ;;  %v2845_v49 = vld [vmem:[%s3172_s6] ss:$0 sm:$0xff] }
 0x1ad   : > { %v1259_v0 = vpop.permute.xlu1 %1258  ;;  %3268 = vst [vmem:[#allocation10_spill] sm:$0xff] %v2798_v39  ;;  %v1041_v27 = vmul.f32 %v2845_v49, %v968_v21  ;;  %v1042_v51 = vmul.f32 %v2845_v49, %v973_v30  ;;  %v1318_v30 = vmul.f32 %v2850_v31, %v1255_v25 }
 0x1ae   : > { %v1319_v14 = vmul.f32 %v2850_v31, %v1259_v0 }
 0x1b0   : > { %v958_v52 = vpop.permute.xlu0 %957 }
 0x1b1   : > { %v1352_v33 = vpop.permute.xlu1 %1351  ;;  %v1039_v16 = vmul.f32 %v2845_v49, %v958_v52 }
 0x1b2   : > { %v1418_v52 = vmul.f32 %v2857_v56, %v1352_v33  ;;  %v2876_v33 = vld [vmem:[%s3172_s6 + $0x3] ss:$0 sm:$0xff] }
 0x1b3   : > { %1224 = vmatmul.mubr.bf16.gmra.mrb[16].mxu1 %v900_v53 }
 0x1b4   : > { %1231 = vmatprep.mubr.bf16.mxu1 %v903_v50  ;;  %v963_v1 = vpop.permute.xlu0 %962 }
 0x1b5   : > { %v1263_v17 = vpop.permute.xlu1 %1262 }
 0x1b8   : > { %v2806_v42 = vpop.permute.xlu0 %977 }
 0x1b9   : > { %v2774_v9 = vpop.permute.xlu1 %1359 }
 0x1ba   : > { %v1420_v0 = vmul.f32 %v2857_v56, %v2774_v9 }
 0x1bb   : > { %1232 = vmatmul.mubr.bf16.gmra.mrb[20].mxu1 %v902_v3  ;;  %v1317_v3 = vmul.f32 %v2850_v31, %v1251_v40 }
 0x1bc   : > { %1239 = vmatprep.mubr.bf16.mxu1 %v905_v22  ;;  %v2810_v10 = vpop.permute.xlu0 %987 }
 0x1bd   : > { %v2776_v20 = vpop.permute.xlu1 %1456 }
 0x1be   : > { %v1520_v9 = vmul.f32 %v2876_v33, %v2776_v20 }
 0x1c0   : > { %v2814_v47 = vpop.permute.xlu0 %997 }
 0x1c1   : > { %v2778_v29 = vpop.permute.xlu1 %1266 }
 0x1c2   : > { %v1321_v20 = vmul.f32 %v2850_v31, %v2778_v29 }
 0x1c3   : > { %1240 = vmatmul.mubr.bf16.gmra.mrb[24].mxu1 %v904_v34 }
 0x1c4   : > { %v2818_v58 = vpop.permute.xlu0 %1012 }
 0x1c5   : > { %v2780_v13 = vpop.permute.xlu1 %1460 }
 0x1c8   : > { %v2822_v15 = vpop.permute.xlu0 %1027 }
 0x1c9   : > { %v2782_v28 = vpop.permute.xlu1 %1270  ;;  %3269 = vst [vmem:[#allocation12_spill] sm:$0xff] %v2822_v15  ;;  %v1040_v15 = vmul.f32 %v2845_v49, %v963_v1 }
 0x1cc   : > { %v2826_v59 = vpop.permute.xlu0 %1452 }
 0x1cd   : > { %v2784_v37 = vpop.permute.xlu1 %1464 }
 0x1d0   : > { %v2830_v12 = vpop.permute.xlu0 %1472 }
 0x1d1   : > { %v2788_v24 = vpop.permute.xlu1 %1371 }
 0x1d2   : > { %v1423_v29 = vmul.f32 %v2857_v56, %v2788_v24 }
 0x1d4   : > { %v2834_v4 = vpop.permute.xlu0 %1484 }
 0x1d5   : > { %v2792_v61 = vpop.permute.xlu1 %1468 }
 0x1d8   : > { %v2838_v5 = vpop.permute.xlu0 %1496 }
 0x1d9   : > { %v2796_v6 = vpop.permute.xlu1 %1375  ;;  %3271 = vst [vmem:[#allocation16_spill] sm:$0xff] %v2838_v5 }
 0x1dc   : > { %v1356_v55 = vpop.permute.xlu0 %1355 }
 0x1dd   : > { %v2800_v32 = vpop.permute.xlu1 %1002  ;;  %v1419_v40 = vmul.f32 %v2857_v56, %v1356_v55 }
 0x1e1   : > { %v2802_v44 = vpop.permute.xlu1 %1282 }
 0x1e5   : > { %v2804_v57 = vpop.permute.xlu1 %1476 }
 0x1e9   : > { %v2808_v18 = vpop.permute.xlu1 %1007 }
 0x1ed   : > { %v2812_v38 = vpop.permute.xlu1 %1383 }
 0x1f1   : > { %v2816_v54 = vpop.permute.xlu1 %1480 }
 0x1f5   : > { %v2820_v46 = vpop.permute.xlu1 %1290 }
 0x1f9   : > { %v2824_v8 = vpop.permute.xlu1 %1387 }
 0x1fd   : > { %v2828_v63 = vpop.permute.xlu1 %1017 }
 0x1fe   : > { %3270 = vst [vmem:[#allocation14_spill] sm:$0xff] %v2828_v63 }
 0x201   : > { %v2832_v26 = vpop.permute.xlu1 %1294 }
 0x205   : > { %v2836_v53 = vpop.permute.xlu1 %1488 }
 0x209   : > { %v2840_v11 = vpop.permute.xlu1 %1022 }
 0x20a   : > { %3272 = vst [vmem:[#allocation18_spill] sm:$0xff] %v2840_v11 }
 0x20d   : > { %v2852_v48 = vpop.permute.xlu1 %1395 }
 0x20e   : > { %3273 = vst [vmem:[#allocation20_spill] sm:$0xff] %v2852_v48 }
 0x211   : > { %v2869_v63 = vpop.permute.xlu1 %1492 }
 0x265   : > { %v1924_v2 = vpop.f32.mrb[32].mxu0 }
 0x266   : > { %v1930_v62 = vpop.f32.mrb[0].mxu1  ;;  %v1925_v60 = vpop.f32.mrb[33].mxu0 }
 0x267   : > { %v1926_v50 = vadd.f32 %v1925_v60, %v1924_v2  ;;  %v1931_v45 = vpop.f32.mrb[1].mxu1  ;;  %v1927_v7 = vpop.f32.mrb[34].mxu0  ;;  %v1320_v2 = vmul.f32 %v2850_v31, %v1263_v17 }
 0x268   : > { %v1932_v22 = vadd.f32 %v1931_v45, %v1930_v62  ;;  %v1933_v43 = vpop.f32.mrb[2].mxu1  ;;  %v1928_v34 = vpop.f32.mrb[35].mxu0 }
 0x269   : > { %v1186_v5 = vadd.f32 %v1926_v50, %v1039_v16  ;;  %v1929_v11 = vadd.f32 %v1928_v34, %v1927_v7  ;;  %v1934_v39 = vpop.f32.mrb[3].mxu1  ;;  %v1364_v60 = vpop.permute.xlu0 %1363  ;;  %v1522_v50 = vmul.f32 %v2876_v33, %v2784_v37  ;;  %v1519_v37 = vmul.f32 %v2876_v33, %v2826_v59 }
 0x26a   : > { %v1194_v21 = vadd.f32 %v1932_v22, %v1041_v27  ;;  %v1935_v48 = vadd.f32 %v1934_v39, %v1933_v43  ;;  %v1421_v17 = vmul.f32 %v2857_v56, %v1364_v60  ;;  %v1044_v43 = vmul.f32 %v2845_v49, %v2770_v36 }
 0x26b   : > { %v1333_v62 = vadd.f32 %v1317_v3, %v1186_v5  ;;  %v1189_v45 = vadd.f32 %v1929_v11, %v1040_v15  ;;  %v1521_v5 = vmul.f32 %v2876_v33, %v2780_v13  ;;  %v1322_v36 = vmul.f32 %v2850_v31, %v2782_v28 }
 0x26c   : > { %v1335_v1 = vadd.f32 %v1319_v14, %v1194_v21  ;;  %v1197_v39 = vadd.f32 %v1935_v48, %v1042_v51  ;;  %v1043_v14 = vmul.f32 %v2845_v49, %v2806_v42  ;;  %v1523_v59 = vmul.f32 %v2876_v33, %v2792_v61 }
 0x26d   : > { %v1434_v16 = vadd.f32 %v1418_v52, %v1333_v62  ;;  %v1334_v25 = vadd.f32 %v1318_v30, %v1189_v45  ;;  %v1368_v3 = vpop.permute.xlu0 %1367 }
 0x26e   : > { %v1436_v15 = vadd.f32 %v1420_v0, %v1335_v1  ;;  %v1336_v11 = vadd.f32 %v1320_v2, %v1197_v39  ;;  %v1936_v55 = vpop.f32.mrb[4].mxu1  ;;  %v2897_v2 = vpop.permute.xlu1 %1302  ;;  %v1422_v60 = vmul.f32 %v2857_v56, %v1368_v3  ;;  %v1045_v39 = vmul.f32 %v2845_v49, %v2810_v10 }
 0x26f   : > { %v1435_v7 = vadd.f32 %v1419_v40, %v1334_v25  ;;  %v1937_v27 = vpop.f32.mrb[5].mxu1  ;;  %v2908_v45 = vadd.f32 %v1519_v37, %v1434_v16  ;;  %v1046_v16 = vmul.f32 %v2845_v49, %v2772_v41 }
 0x270   : > { %v2887_v48 = vadd.f32 %v1521_v5, %v1436_v15  ;;  %v1437_v51 = vadd.f32 %v1421_v17, %v1336_v11  ;;  %v1938_v22 = vadd.f32 %v1937_v27, %v1936_v55  ;;  %v1939_v13 = vpop.f32.mrb[6].mxu1  ;;  %v1424_v27 = vmul.f32 %v2857_v56, %v2796_v6 }
 0x271   : > { %v2895_v34 = vadd.f32 %v1520_v9, %v1435_v7  ;;  %v1940_v52 = vpop.f32.mrb[7].mxu1  ;;  %v1323_v9 = vmul.f32 %v2850_v31, %v2786_v35  ;;  %v1324_v7 = vmul.f32 %v2850_v31, %v2790_v19  ;;  %v1047_v35 = vmul.f32 %v2845_v49, %v2814_v47 }
 0x272   : > { %v2899_v42 = vadd.f32 %v1522_v50, %v1437_v51  ;;  %v1202_v21 = vadd.f32 %v1938_v22, %v1043_v14  ;;  %v1941_v30 = vadd.f32 %v1940_v52, %v1939_v13  ;;  %v2912_v5 = vpop.permute.xlu1 %1399  ;;  %v1048_v6 = vmul.f32 %v2845_v49, %v2800_v32 }
 0x273   : > { %v1553_v28 = vadd.f32 %v2895_v34, %v2908_v45  ;;  %v1326_v47 = vmul.f32 %v2850_v31, %v2794_v23 }
 0x274   : > { %v1337_v40 = vadd.f32 %v1321_v20, %v1202_v21  ;;  %v1205_v62 = vadd.f32 %v1941_v30, %v1044_v43  ;;  %v1380_v20 = vpop.permute.xlu0 %1379  ;;  %v1325_v21 = vmul.f32 %v2850_v31, %v2802_v44 }
 0x275   : > { %v1554_v14 = vadd.f32 %v1553_v28, %v2887_v48 }
 0x276   : > { %v1438_v0 = vadd.f32 %v1422_v60, %v1337_v40  ;;  %v1338_v17 = vadd.f32 %v1322_v36, %v1205_v62  ;;  %v1942_v1 = vpop.f32.mrb[8].mxu1  ;;  %v2927_v22 = vpop.permute.xlu1 %1032  ;;  %v1524_v36 = vmul.f32 %v2876_v33, %v2830_v12  ;;  %v1425_v40 = vmul.f32 %v2857_v56, %v1380_v20 }
 0x277   : > { %v1943_v25 = vpop.f32.mrb[9].mxu1  ;;  %v1555_v52 = vadd.f32 %v1554_v14, %v2899_v42  ;;  %v1426_v12 = vmul.f32 %v2857_v56, %v2812_v38  ;;  %v1050_v38 = vmul.f32 %v2845_v49, %v2818_v58  ;;  %v1328_v58 = vmul.f32 %v2850_v31, %v2832_v26  ;;  %v3275_v26 = vld [vmem:[#allocation20_spill] sm:$0xff] }
 0x278   : > { %v2916_v15 = vadd.f32 %v1523_v59, %v1438_v0  ;;  %v1439_v24 = vadd.f32 %v1423_v29, %v1338_v17  ;;  %v1944_v11 = vadd.f32 %v1943_v25, %v1942_v1  ;;  %v1945_v55 = vpop.f32.mrb[10].mxu1  ;;  %v1525_v59 = vmul.f32 %v2876_v33, %v2804_v57 }
 0x279   : > { %v1946_v61 = vpop.f32.mrb[11].mxu1  ;;  %v1049_v57 = vmul.f32 %v2845_v49, %v2808_v18  ;;  %v1527_v18 = vmul.f32 %v2876_v33, %v2834_v4  ;;  %v1528_v4 = vmul.f32 %v2876_v33, %v2836_v53 }
 0x27a   : > { %v1210_v50 = vadd.f32 %v1944_v11, %v1045_v39  ;;  %v1947_v10 = vadd.f32 %v1946_v61, %v1945_v55  ;;  %v2943_v0 = vpop.permute.xlu1 %1306  ;;  %v1556_v32 = vadd.f32 %v1555_v52, %v2916_v15  ;;  %v2946_v17 = vadd.f32 %v1524_v36, %v1439_v24  ;;  %v1392_v39 = vpop.permute.xlu0 %1391 }
 0x27b   : > { %v1526_v61 = vmul.f32 %v2876_v33, %v2816_v54 }
 0x27c   : > { %v1339_v51 = vadd.f32 %v1323_v9, %v1210_v50  ;;  %v1213_v3 = vadd.f32 %v1947_v10, %v1046_v16  ;;  %v1557_v24 = vadd.f32 %v1556_v32, %v2946_v17  ;;  %v1327_v10 = vmul.f32 %v2850_v31, %v2820_v46  ;;  %v3276_v32 = vld [vmem:[#allocation10_spill] sm:$0xff] }
 0x27e   : > { %v1440_v13 = vadd.f32 %v1424_v27, %v1339_v51  ;;  %v1340_v43 = vadd.f32 %v1324_v7, %v1213_v3  ;;  %v1948_v41 = vpop.f32.mrb[12].mxu1  ;;  %v1427_v7 = vmul.f32 %v2857_v56, %v2824_v8  ;;  %v1501_v14 = vpop.permute.xlu1 %1500 }
 0x27f   : > { %v1949_v37 = vpop.f32.mrb[13].mxu1  ;;  %v1404_v46 = vpop.permute.xlu0 %1403 }
 0x280   : > { %v1950_v19 = vadd.f32 %v1949_v37, %v1948_v41  ;;  %v1951_v60 = vpop.f32.mrb[14].mxu1  ;;  %v2950_v25 = vadd.f32 %v1525_v59, %v1440_v13  ;;  %v1441_v28 = vadd.f32 %v1425_v40, %v1340_v43  ;;  %v1428_v43 = vmul.f32 %v2857_v56, %v1392_v39 }
 0x281   : > { %v1952_v30 = vpop.f32.mrb[15].mxu1 }
 0x282   : > { %v1218_v62 = vadd.f32 %v1950_v19, %v1047_v35  ;;  %v1953_v29 = vadd.f32 %v1952_v30, %v1951_v60  ;;  %v1558_v54 = vadd.f32 %v1557_v24, %v2950_v25  ;;  %v2966_v51 = vadd.f32 %v1526_v61, %v1441_v28  ;;  %v1311_v40 = vpop.permute.xlu1 %1310 }
 0x283   : > { %v1429_v30 = vmul.f32 %v2857_v56, %v3275_v26  ;;  %v1330_v24 = vmul.f32 %v2850_v31, %v2897_v2  ;;  %v3279_v2 = vld [vmem:[#allocation12_spill] sm:$0xff] }
 0x284   : > { %v1341_v44 = vadd.f32 %v1325_v21, %v1218_v62  ;;  %v1221_v1 = vadd.f32 %v1953_v29, %v1048_v6  ;;  %v1559_v35 = vadd.f32 %v1558_v54, %v2966_v51  ;;  %v3274_v6 = vld [vmem:[#allocation14_spill] sm:$0xff]  ;;  %v1529_v62 = vmul.f32 %v2876_v33, %v2869_v63  ;;  %v3278_v63 = vld [vmem:[#allocation16_spill] sm:$0xff] }
 0x285   : > { %v1051_v21 = vmul.f32 %v2845_v49, %v3274_v6  ;;  %v1530_v61 = vmul.f32 %v2876_v33, %v3278_v63 }
 0x286   : > { %v1342_v11 = vadd.f32 %v1326_v47, %v1221_v1  ;;  %v1954_v23 = vpop.f32.mrb[16].mxu1  ;;  %v1442_v16 = vadd.f32 %v1426_v12, %v1341_v44  ;;  %v1329_v44 = vmul.f32 %v2850_v31, %v3276_v32  ;;  %v3277_v1 = vld [vmem:[#allocation18_spill] sm:$0xff]  ;;  %v1408_v12 = vpop.permute.xlu0 %1407 }
 0x287   : > { %v1955_v55 = vpop.f32.mrb[17].mxu1  ;;  %v1052_v39 = vmul.f32 %v2845_v49, %v3277_v1  ;;  %v1432_v26 = vmul.f32 %v2857_v56, %v1408_v12 }
 0x288   : > { %v1956_v9 = vadd.f32 %v1955_v55, %v1954_v23  ;;  %v1957_v50 = vpop.f32.mrb[18].mxu1  ;;  %v2971_v41 = vadd.f32 %v1527_v18, %v1442_v16  ;;  %v1443_v8 = vadd.f32 %v1427_v7, %v1342_v11  ;;  %v1430_v16 = vmul.f32 %v2857_v56, %v2912_v5  ;;  %v1505_v18 = vpop.permute.xlu1 %1504 }
 0x289   : > { %v1958_v27 = vpop.f32.mrb[19].mxu1  ;;  %v1531_v7 = vmul.f32 %v2876_v33, %v1501_v14 }
 0x28a   : > { %v1226_v3 = vadd.f32 %v1956_v9, %v1049_v57  ;;  %v1959_v13 = vadd.f32 %v1958_v27, %v1957_v50  ;;  %v1560_v29 = vadd.f32 %v1559_v35, %v2971_v41  ;;  %v2983_v47 = vadd.f32 %v1528_v4, %v1443_v8  ;;  %v1412_v5 = vpop.permute.xlu0 %1411 }
 0x28b   : > { %v1054_v35 = vmul.f32 %v2845_v49, %v2927_v22  ;;  %v1433_v22 = vmul.f32 %v2857_v56, %v1412_v5 }
 0x28c   : > { %v1343_v20 = vadd.f32 %v1327_v10, %v1226_v3  ;;  %v1229_v37 = vadd.f32 %v1959_v13, %v1050_v38  ;;  %v1561_v9 = vadd.f32 %v1560_v29, %v2983_v47  ;;  %v1431_v10 = vmul.f32 %v2857_v56, %v1404_v46 }
 0x28d   : > { %v1532_v46 = vmul.f32 %v2876_v33, %v1505_v18 }
 0x28e   : > { %v1444_v52 = vadd.f32 %v1428_v43, %v1343_v20  ;;  %v1344_v19 = vadd.f32 %v1328_v58, %v1229_v37  ;;  %v1960_v60 = vpop.f32.mrb[20].mxu1  ;;  %v1053_v43 = vmul.f32 %v2845_v49, %v3279_v2 }
 0x28f   : > { %v1961_v36 = vpop.f32.mrb[21].mxu1 }
 0x290   : > { %v1962_v53 = vadd.f32 %v1961_v36, %v1960_v60  ;;  %v1963_v59 = vpop.f32.mrb[22].mxu1  ;;  %v2989_v11 = vadd.f32 %v1529_v62, %v1444_v52  ;;  %v1445_v23 = vadd.f32 %v1429_v30, %v1344_v19  ;;  %v1331_v19 = vmul.f32 %v2850_v31, %v2943_v0  ;;  %v1509_v36 = vpop.permute.xlu1 %1508 }
 0x291   : > { %v1964_v28 = vpop.f32.mrb[23].mxu1  ;;  %v1332_v30 = vmul.f32 %v2850_v31, %v1311_v40  ;;  %v1513_v62 = vpop.permute.xlu0 %1512  ;;  %v1533_v0 = vmul.f32 %v2876_v33, %v1509_v36 }
 0x292   : > { %v1234_v57 = vadd.f32 %v1962_v53, %v1051_v21  ;;  %v1965_v55 = vadd.f32 %v1964_v28, %v1963_v59  ;;  %v3000_v27 = vadd.f32 %v1530_v61, %v1445_v23  ;;  %v1562_v13 = vadd.f32 %v1561_v9, %v2989_v11 }
 0x293   : > { %v1534_v1 = vmul.f32 %v2876_v33, %v1513_v62 }
 0x294   : > { %v1345_v50 = vadd.f32 %v1329_v44, %v1234_v57  ;;  %v1237_v38 = vadd.f32 %v1965_v55, %v1052_v39  ;;  %v1563_v60 = vadd.f32 %v1562_v13, %v3000_v27 }
 0x296   : > { %v1446_v54 = vadd.f32 %v1430_v16, %v1345_v50  ;;  %v1346_v3 = vadd.f32 %v1330_v24, %v1237_v38  ;;  %v1966_v58 = vpop.f32.mrb[24].mxu1 }
 0x297   : > { %v1967_v8 = vpop.f32.mrb[25].mxu1 }
 0x298   : > { %v3005_v20 = vadd.f32 %v1531_v7, %v1446_v54  ;;  %v1447_v37 = vadd.f32 %v1431_v10, %v1346_v3  ;;  %v1968_v4 = vadd.f32 %v1967_v8, %v1966_v58  ;;  %v1969_v14 = vpop.f32.mrb[26].mxu1 }
 0x299   : > { %v1970_v52 = vpop.f32.mrb[27].mxu1 }
 0x29a   : > { %v1242_v6 = vadd.f32 %v1968_v4, %v1053_v43  ;;  %v1971_v21 = vadd.f32 %v1970_v52, %v1969_v14  ;;  %v3015_v29 = vadd.f32 %v1532_v46, %v1447_v37  ;;  %v1564_v53 = vadd.f32 %v1563_v60, %v3005_v20 }
 0x29c   : > { %v1347_v59 = vadd.f32 %v1331_v19, %v1242_v6  ;;  %v1245_v49 = vadd.f32 %v1971_v21, %v1054_v35  ;;  %v1565_v39 = vadd.f32 %v1564_v53, %v3015_v29 }
 0x29e   : > { %v1448_v32 = vadd.f32 %v1432_v26, %v1347_v59  ;;  %v1348_v44 = vadd.f32 %v1332_v30, %v1245_v49 }
 0x2a0   : > { %v3022_v12 = vadd.f32 %v1533_v0, %v1448_v32  ;;  %v1449_v31 = vadd.f32 %v1433_v22, %v1348_v44 }
 0x2a2   : > { %v1566_v40 = vadd.f32 %v1565_v39, %v3022_v12  ;;  %v3025_v28 = vadd.f32 %v1534_v1, %v1449_v31 }
 0x2a4   : > { %v1567_v23 = vadd.f32 %v1566_v40, %v3025_v28 }
 0x2a6   : > { %v1568_v57 = vrot.slane %v1567_v23, 4 }
 0x2a8   : > { %v1569_v55 = vadd.f32 %v1568_v57, %v1567_v23 }
 0x2aa   : > { %v1570_v56 = vrot.slane %v1569_v55, 2 }
 0x2ac   : > { %v1571_v63 = vadd.f32 %v1570_v56, %v1569_v55 }
 0x2ae   : > { %v1572_v61 = vrot.slane %v1571_v63, 1 }
 0x2b0   : > { %v1573_v24 = vadd.f32 %v1572_v61, %v1571_v63 }
 0x2b2   : > { %v1574_v16 = vmul.f32 0.0078125, %v1573_v24 }
 0x2b4   : > { %v1575_v33 = vsub.f32 %v2908_v45, %v1574_v16  ;;  %v1576_v9 = vsub.f32 %v2895_v34, %v1574_v16  ;;  %v1577_v50 = vsub.f32 %v2887_v48, %v1574_v16  ;;  %v1578_v7 = vsub.f32 %v2899_v42, %v1574_v16 }
 0x2b5   : > { %v1579_v18 = vsub.f32 %v2916_v15, %v1574_v16  ;;  %v1580_v13 = vsub.f32 %v2946_v17, %v1574_v16  ;;  %v1581_v43 = vsub.f32 %v2950_v25, %v1574_v16  ;;  %v1582_v37 = vsub.f32 %v2966_v51, %v1574_v16 }
 0x2b6   : > { %v1591_v38 = vmul.f32 %v1575_v33, %v1575_v33  ;;  %v1592_v10 = vmul.f32 %v1576_v9, %v1576_v9  ;;  %v1593_v54 = vmul.f32 %v1577_v50, %v1577_v50  ;;  %v1594_v58 = vmul.f32 %v1578_v7, %v1578_v7 }
 0x2b7   : > { %v1595_v5 = vmul.f32 %v1579_v18, %v1579_v18  ;;  %v1596_v46 = vmul.f32 %v1580_v13, %v1580_v13  ;;  %v1583_v14 = vsub.f32 %v2971_v41, %v1574_v16  ;;  %v1597_v35 = vmul.f32 %v1581_v43, %v1581_v43 }
 0x2b8   : > { %v1607_v3 = vadd.f32 %v1592_v10, %v1591_v38  ;;  %v1584_v19 = vsub.f32 %v2983_v47, %v1574_v16  ;;  %v1598_v60 = vmul.f32 %v1582_v37, %v1582_v37  ;;  %v1585_v21 = vsub.f32 %v2989_v11, %v1574_v16 }
 0x2b9   : > { %v1599_v26 = vmul.f32 %v1583_v14, %v1583_v14  ;;  %v1586_v36 = vsub.f32 %v3000_v27, %v1574_v16  ;;  %v1587_v59 = vsub.f32 %v3005_v20, %v1574_v16  ;;  %v1588_v32 = vsub.f32 %v3015_v29, %v1574_v16 }
 0x2ba   : > { %v1608_v2 = vadd.f32 %v1607_v3, %v1593_v54  ;;  %v1600_v62 = vmul.f32 %v1584_v19, %v1584_v19  ;;  %v1601_v49 = vmul.f32 %v1585_v21, %v1585_v21  ;;  %v1589_v1 = vsub.f32 %v3022_v12, %v1574_v16  ;;  %v1551_v3 = vld [vmem:[%s3173_s7] sm:$0x1] }
 0x2bb   : > { %v1602_v0 = vmul.f32 %v1586_v36, %v1586_v36  ;;  %v1603_v39 = vmul.f32 %v1587_v59, %v1587_v59  ;;  %v1590_v40 = vsub.f32 %v3025_v28, %v1574_v16  ;;  %v1604_v23 = vmul.f32 %v1588_v32, %v1588_v32 }
 0x2bc   : > { %v1609_v8 = vadd.f32 %v1608_v2, %v1594_v58  ;;  %v1605_v55 = vmul.f32 %v1589_v1, %v1589_v1  ;;  %v1552_v2 = vld [vmem:[%s3174_s8] sm:$0x1] }
 0x2bd   : > { %v1606_v63 = vmul.f32 %v1590_v40, %v1590_v40 }
 0x2be   : > { %v1610_v4 = vadd.f32 %v1609_v8, %v1595_v5  ;;  %v3280_v5 = vld [vmem:[#allocation28_spill] sm:$0xff] }
 0x2c0   : > { %v1611_v52 = vadd.f32 %v1610_v4, %v1596_v46 }
 0x2c2   : > { %v1612_v6 = vadd.f32 %v1611_v52, %v1597_v35 }
 0x2c4   : > { %v1613_v30 = vadd.f32 %v1612_v6, %v1598_v60  ;;  %v3071_v6 = vld [vmem:[%s3175_s9] ss:$0 sm:$0xff] }
 0x2c6   : > { %v1614_v53 = vadd.f32 %v1613_v30, %v1599_v26 }
 0x2c8   : > { %v1615_v22 = vadd.f32 %v1614_v53, %v1600_v62 }
 0x2ca   : > { %v1616_v44 = vadd.f32 %v1615_v22, %v1601_v49 }
 0x2cc   : > { %v1617_v31 = vadd.f32 %v1616_v44, %v1602_v0 }
 0x2ce   : > { %v1618_v57 = vadd.f32 %v1617_v31, %v1603_v39 }
 0x2d0   : > { %v1619_v56 = vadd.f32 %v1618_v57, %v1604_v23 }
 0x2d2   : > { %v1620_v61 = vadd.f32 %v1619_v56, %v1605_v55 }
 0x2d4   : > { %v1621_v24 = vadd.f32 %v1620_v61, %v1606_v63 }
 0x2d6   : > { %v1622_v33 = vrot.slane %v1621_v24, 4 }
 0x2d8   : > { %v1623_v9 = vadd.f32 %v1622_v33, %v1621_v24 }
 0x2da   : > { %v1624_v50 = vrot.slane %v1623_v9, 2 }
 0x2dc   : > { %v1625_v38 = vadd.f32 %v1624_v50, %v1623_v9 }
 0x2de   : > { %v1626_v10 = vrot.slane %v1625_v38, 1 }
 0x2e0   : > { %v1627_v7 = vadd.f32 %v1626_v10, %v1625_v38 }
 0x2e2   : > { %v1628_v18 = vmul.f32 0.0078125, %v1627_v7 }
 0x2e4   : > { %v1629_v54 = vadd.f32 1e-05, %v1628_v18 }
 0x2e6   : > { %2068 = vrsqrt.f32 %v1629_v54 }
 0x2f0   : > { %v2069_v13 = vpop.eup %2068 }
 0x2f1   : > { %v1631_v58 = vmul.f32 %v2069_v13, %v1551_v3 }
 0x2f3   : > { %v1632_v43 = vmul.f32 %v1631_v58, %v1574_v16  ;;  %v3051_v8 = vrot.slane %v1631_v58, %v3280_v5 }
 0x2f5   : > { %v1633_v37 = vsub.f32 %v1552_v2, %v1632_v43  ;;  %v1641_v46 = vmul.f32 %v3051_v8, %v2895_v34  ;;  %v1640_v14 = vmul.f32 %v3051_v8, %v2908_v45  ;;  %v1643_v35 = vmul.f32 %v3051_v8, %v2899_v42 }
 0x2f6   : > { %v1642_v52 = vmul.f32 %v3051_v8, %v2887_v48  ;;  %v1645_v45 = vmul.f32 %v3051_v8, %v2946_v17  ;;  %v1644_v42 = vmul.f32 %v3051_v8, %v2916_v15  ;;  %v1647_v49 = vmul.f32 %v3051_v8, %v2966_v51 }
 0x2f7   : > { %v3056_v4 = vrot.slane %v1633_v37, %v3280_v5  ;;  %v1646_v17 = vmul.f32 %v3051_v8, %v2950_v25  ;;  %v1649_v51 = vmul.f32 %v3051_v8, %v2983_v47  ;;  %v1648_v25 = vmul.f32 %v3051_v8, %v2971_v41 }
 0x2f8   : > { %v1651_v56 = vmul.f32 %v3051_v8, %v3000_v27  ;;  %v1650_v47 = vmul.f32 %v3051_v8, %v2989_v11  ;;  %v1653_v50 = vmul.f32 %v3051_v8, %v3015_v29  ;;  %v1652_v38 = vmul.f32 %v3051_v8, %v3005_v20 }
 0x2f9   : > { %v1663_v16 = vadd.f32 %v3056_v4, %v1641_v46  ;;  %v1662_v19 = vadd.f32 %v3056_v4, %v1640_v14  ;;  %v1665_v60 = vadd.f32 %v3056_v4, %v1643_v35  ;;  %v1664_v34 = vadd.f32 %v3056_v4, %v1642_v52  ;;  %v1902_v35 = vld [vmem:[#allocation2] ss:$0 sm:$0xff] }
 0x2fa   : > { %v1667_v26 = vadd.f32 %v3056_v4, %v1645_v45  ;;  %v1666_v30 = vadd.f32 %v3056_v4, %v1644_v42  ;;  %v1669_v15 = vadd.f32 %v3056_v4, %v1647_v49  ;;  %v1668_v22 = vadd.f32 %v3056_v4, %v1646_v17 }
 0x2fb   : > { %v1679_v48 = vmax.f32 %v1663_v16, 0.0  ;;  %v1678_v21 = vmax.f32 %v1662_v19, 0.0  ;;  %v1681_v53 = vmax.f32 %v1665_v60, 0.0  ;;  %v1680_v59 = vmax.f32 %v1664_v34, 0.0 }
 0x2fc   : > { %v1683_v44 = vmax.f32 %v1667_v26, 0.0  ;;  %v1682_v1 = vmax.f32 %v1666_v30, 0.0  ;;  %v1685_v39 = vmax.f32 %v1669_v15, 0.0  ;;  %v1684_v31 = vmax.f32 %v1668_v22, 0.0 }
 0x2fd   : > { %v1702_v36 = vmul.f32 %v3071_v6, %v1679_v48  ;;  %v1701_v62 = vmul.f32 %v3071_v6, %v1678_v21  ;;  %v1704_v32 = vmul.f32 %v3071_v6, %v1681_v53  ;;  %v1703_v0 = vmul.f32 %v3071_v6, %v1680_v59 }
 0x2fe   : > { %v1706_v40 = vmul.f32 %v3071_v6, %v1683_v44  ;;  %v1705_v23 = vmul.f32 %v3071_v6, %v1682_v1  ;;  %v1671_v57 = vadd.f32 %v3056_v4, %v1649_v51  ;;  %v1670_v55 = vadd.f32 %v3056_v4, %v1648_v25 }
 0x2ff   : > { %1719 = vadd.xlane.f32.xlu0 %v1702_v36  ;;  %1717 = vadd.xlane.f32.xlu1 %v1701_v62  ;;  %v1708_v41 = vmul.f32 %v3071_v6, %v1685_v39  ;;  %v1707_v63 = vmul.f32 %v3071_v6, %v1684_v31  ;;  %v1673_v33 = vadd.f32 %v3056_v4, %v1651_v56 }
 0x300   : > { %v1687_v61 = vmax.f32 %v1671_v57, 0.0  ;;  %v1686_v24 = vmax.f32 %v1670_v55, 0.0  ;;  %v1672_v9 = vadd.f32 %v3056_v4, %v1650_v47  ;;  %v1675_v11 = vadd.f32 %v3056_v4, %v1653_v50 }
 0x301   : > { %v1674_v27 = vadd.f32 %v3056_v4, %v1652_v38  ;;  %v1689_v18 = vmax.f32 %v1673_v33, 0.0  ;;  %v1655_v29 = vmul.f32 %v3051_v8, %v3025_v28  ;;  %v1654_v20 = vmul.f32 %v3051_v8, %v3022_v12 }
 0x302   : > { %v1710_v10 = vmul.f32 %v3071_v6, %v1687_v61  ;;  %v1709_v7 = vmul.f32 %v3071_v6, %v1686_v24  ;;  %v1688_v54 = vmax.f32 %v1672_v9, 0.0  ;;  %v1691_v3 = vmax.f32 %v1675_v11, 0.0 }
 0x303   : > { %1723 = vadd.xlane.f32.xlu0 %v1704_v32  ;;  %1721 = vadd.xlane.f32.xlu1 %v1703_v0  ;;  %v1690_v13 = vmax.f32 %v1674_v27, 0.0  ;;  %v1712_v58 = vmul.f32 %v3071_v6, %v1689_v18  ;;  %v1677_v43 = vadd.f32 %v3056_v4, %v1655_v29  ;;  %v1676_v5 = vadd.f32 %v3056_v4, %v1654_v20 }
 0x304   : > { %v1711_v2 = vmul.f32 %v3071_v6, %v1688_v54  ;;  %v1714_v37 = vmul.f32 %v3071_v6, %v1691_v3 }
 0x305   : > { %v1713_v28 = vmul.f32 %v3071_v6, %v1690_v13  ;;  %v1693_v46 = vmax.f32 %v1677_v43, 0.0  ;;  %v1692_v14 = vmax.f32 %v1676_v5, 0.0 }
 0x307   : > { %1727 = vadd.xlane.f32.xlu0 %v1706_v40  ;;  %1725 = vadd.xlane.f32.xlu1 %v1705_v23  ;;  %v1716_v12 = vmul.f32 %v3071_v6, %v1693_v46  ;;  %v1715_v8 = vmul.f32 %v3071_v6, %v1692_v14 }
 0x30b   : > { %1731 = vadd.xlane.f32.xlu0 %v1708_v41  ;;  %1729 = vadd.xlane.f32.xlu1 %v1707_v63 }
 0x30f   : > { %1735 = vadd.xlane.f32.xlu0 %v1710_v10  ;;  %1733 = vadd.xlane.f32.xlu1 %v1709_v7 }
 0x313   : > { %1739 = vadd.xlane.f32.xlu0 %v1712_v58  ;;  %1737 = vadd.xlane.f32.xlu1 %v1711_v2 }
 0x317   : > { %1743 = vadd.xlane.f32.xlu0 %v1714_v37  ;;  %1741 = vadd.xlane.f32.xlu1 %v1713_v28 }
 0x31b   : > { %1747 = vadd.xlane.f32.xlu0 %v1716_v12  ;;  %1745 = vadd.xlane.f32.xlu1 %v1715_v8 }
 0x38c   : > { %v1720_v4 = vpop.xlane.xlu0 %1719  ;;  %v1718_v52 = vpop.xlane.xlu1 %1717 }
 0x38d   : > { %v1757_v16 = vadd.f32 %v1902_v35, %v1720_v4  ;;  %v1756_v19 = vadd.f32 %v1902_v35, %v1718_v52 }
 0x38f   : > { %1774 = vst.msk [vmem:[%s3129_s21 + $0x8] sm:$0xff] %vm1772_vm1, %v1757_v16  ;;  %1773 = vst.msk [vmem:[%s3129_s21] sm:$0xff] %vm1772_vm1, %v1756_v19 }
 0x390   : > { %v1724_v60 = vpop.xlane.xlu0 %1723  ;;  %v1722_v34 = vpop.xlane.xlu1 %1721 }
 0x391   : > { %v1759_v6 = vadd.f32 %v1902_v35, %v1724_v60  ;;  %v1758_v45 = vadd.f32 %v1902_v35, %v1722_v34 }
 0x393   : > { %1776 = vst.msk [vmem:[%s3129_s21 + $0x18] sm:$0xff] %vm1772_vm1, %v1759_v6  ;;  %1775 = vst.msk [vmem:[%s3129_s21 + $0x10] sm:$0xff] %vm1772_vm1, %v1758_v45 }
 0x394   : > { %v1728_v42 = vpop.xlane.xlu0 %1727  ;;  %v1726_v48 = vpop.xlane.xlu1 %1725 }
 0x395   : > { %v1761_v21 = vadd.f32 %v1902_v35, %v1728_v42  ;;  %v1760_v26 = vadd.f32 %v1902_v35, %v1726_v48 }
 0x397   : > { %1778 = vst.msk [vmem:[%s3129_s21 + $0x28] sm:$0xff] %vm1772_vm1, %v1761_v21  ;;  %1777 = vst.msk [vmem:[%s3129_s21 + $0x20] sm:$0xff] %vm1772_vm1, %v1760_v26 }
 0x398   : > { %v1732_v30 = vpop.xlane.xlu0 %1731  ;;  %v1730_v36 = vpop.xlane.xlu1 %1729 }
 0x399   : > { %v1763_v62 = vadd.f32 %v1902_v35, %v1732_v30  ;;  %v1762_v53 = vadd.f32 %v1902_v35, %v1730_v36 }
 0x39b   : > { %1780 = vst.msk [vmem:[%s3129_s21 + $0x38] sm:$0xff] %vm1772_vm1, %v1763_v62  ;;  %1779 = vst.msk [vmem:[%s3129_s21 + $0x30] sm:$0xff] %vm1772_vm1, %v1762_v53 }
 0x39c   : > { %v1736_v59 = vpop.xlane.xlu0 %1735  ;;  %v1734_v49 = vpop.xlane.xlu1 %1733 }
 0x39d   : > { %v1765_v17 = vadd.f32 %v1902_v35, %v1736_v59  ;;  %v1764_v15 = vadd.f32 %v1902_v35, %v1734_v49 }
 0x39f   : > { %1782 = vst.msk [vmem:[%s3129_s21 + $0x48] sm:$0xff] %vm1772_vm1, %v1765_v17  ;;  %1781 = vst.msk [vmem:[%s3129_s21 + $0x40] sm:$0xff] %vm1772_vm1, %v1764_v15 }
 0x3a0   : > { %v1740_v22 = vpop.xlane.xlu0 %1739  ;;  %v1738_v32 = vpop.xlane.xlu1 %1737 }
 0x3a1   : > { %v1767_v0 = vadd.f32 %v1902_v35, %v1740_v22  ;;  %v1766_v44 = vadd.f32 %v1902_v35, %v1738_v32 }
 0x3a3   : > { %1784 = vst.msk [vmem:[%s3129_s21 + $0x58] sm:$0xff] %vm1772_vm1, %v1767_v0  ;;  %1783 = vst.msk [vmem:[%s3129_s21 + $0x50] sm:$0xff] %vm1772_vm1, %v1766_v44 }
 0x3a4   : > { %v1744_v1 = vpop.xlane.xlu0 %1743  ;;  %v1742_v51 = vpop.xlane.xlu1 %1741 }
 0x3a5   : > { %v1769_v25 = vadd.f32 %v1902_v35, %v1744_v1  ;;  %v1768_v39 = vadd.f32 %v1902_v35, %v1742_v51 }
 0x3a7   : > { %1786 = vst.msk [vmem:[%s3129_s21 + $0x68] sm:$0xff] %vm1772_vm1, %v1769_v25  ;;  %1785 = vst.msk [vmem:[%s3129_s21 + $0x60] sm:$0xff] %vm1772_vm1, %v1768_v39 }
 0x3a8   : > { %v1748_v31 = vpop.xlane.xlu0 %1747  ;;  %v1746_v40 = vpop.xlane.xlu1 %1745 }
 0x3a9   : > { %v1771_v23 = vadd.f32 %v1902_v35, %v1748_v31  ;;  %v1770_v57 = vadd.f32 %v1902_v35, %v1746_v40 }
 0x3ab   : > { %1788 = vst.msk [vmem:[%s3129_s21 + $0x78] sm:$0xff] %vm1772_vm1, %v1771_v23  ;;  %1787 = vst.msk [vmem:[%s3129_s21 + $0x70] sm:$0xff] %vm1772_vm1, %v1770_v57 }
 0x3ac PF: > { %s23_s19 = sadd.s32 1, %s2076_s19  }
 0x3ad   : > { %p20_p4 = scmp.ge.s32.totalorder %s23_s19, 6  }
 0x3af   :  { %22 = sbr.rel (!%p20_p4) target bundleno = 3 (0x3), region = 97 }

</bundles_post_ra>
